<compile_context>
chip_gen: v7x
topology: tpu7x:2x2x1
jax: 0.10.0
libtpu: 0.0.40
codegen_flags: <defaults>
</compile_context>

<pallas_src>
import math

import jax
import jax.numpy as jnp
from jax.experimental import pallas as pl
from jax.experimental.pallas import tpu as pltpu

HIDDEN = 64      # lstm_hidden_dim; fixed at 64 by nn.Linear(64, 3) / nn.Linear(64, 2)
HEAD_PAD = 128   # fused class(3) + domain(2) head columns, padded to one full lane tile


# ------------------------------------------------------------------ fused DANN kernel
def _dann_kernel(x_ref, wih_ref, whh_ref, b_ref, wheads_ref, bheads_ref,
                 out_ref, gx_scr, h_scr):
    """LSTM recurrence + fused class/domain heads, everything resident in VMEM."""
    B, T, D = x_ref.shape
    H = whh_ref.shape[0]
    G = 4 * H

    # ---- one-time input projection (LSTM biases folded in), stored TIME-major --------
    x2d = x_ref[...].reshape(B * T, D)                          # batch-major rows b*T+t
    gx = jnp.dot(x2d.astype(jnp.bfloat16), wih_ref[...],
                 preferred_element_type=jnp.float32) + b_ref[...]     # (B*T, 4H) f32
    gx_scr[...] = jnp.transpose(gx.reshape(B, T, G), (1, 0, 2))       # (T, B, 4H)

    # hoisted constants: gate-column masks (PyTorch gate order i, f, g, o)
    lane = jax.lax.broadcasted_iota(jnp.int32, (B, G), 1)
    g_sel = (lane >= 2 * H) & (lane < 3 * H)
    gate_scale = jnp.where(g_sel, 1.0, 0.5).astype(jnp.float32)  # tanh-identity prescale

    whh = whh_ref[...]                                           # (H, 4H) bf16, loop-resident

    h = jnp.zeros((B, H), jnp.float32)                           # hidden0=None -> zeros
    c = jnp.zeros((B, H), jnp.float32)

    # ---- recurrence: critical path = h@whh + ONE tanh slab + cell update -------------
    for t in range(T):  # static trip count -> fully unrolled, no grid overhead
        gates = gx_scr[t] + jnp.dot(h.astype(jnp.bfloat16), whh,
                                    preferred_element_type=jnp.float32)   # (B, 4H) f32
        # sigmoid(x) = 0.5*tanh(x/2) + 0.5  -> single EUP tanh slab per step
        th = jnp.tanh(gates * gate_scale)
        act = jnp.where(g_sel, th, 0.5 * th + 0.5)
        i_t = act[:, 0 * H:1 * H]
        f_t = act[:, 1 * H:2 * H]
        g_t = act[:, 2 * H:3 * H]
        o_t = act[:, 3 * H:4 * H]
        c = f_t * c + i_t * g_t
        h = o_t * jnp.tanh(c)
        h_scr[t] = h                                             # contiguous (B, H) store

    # ---- post-loop: fused heads, batch-axis softmax, sigmoid, one lane-dense store ----
    h_all = h_scr[...].reshape(T * B, H)
    hd = jnp.dot(h_all.astype(jnp.bfloat16), wheads_ref[...],
                 preferred_element_type=jnp.float32) + bheads_ref[...]    # (T*B, 128)
    hd3 = hd.reshape(T, B, HEAD_PAD)
    # legacy nn.Softmax() on a 3-D tensor normalizes over dim=0 (batch); each (t, column)
    # is independent, so reduce over the B (sublane) axis per time step.
    m = jnp.max(hd3, axis=1, keepdims=True)
    e = jnp.exp(hd3 - m)
    sm = e / jnp.sum(e, axis=1, keepdims=True)
    # ReverseLayerF (GRL) is identity in the forward pass.
    sg = jax.nn.sigmoid(hd3)
    out_lane = jax.lax.broadcasted_iota(jnp.int32, (T, B, HEAD_PAD), 2)
    fused = jnp.where(out_lane < 3, sm, sg)                      # cols 0:3 class, 3:5 domain
    out_ref[...] = jnp.transpose(fused, (1, 0, 2))               # (B, T, 128) full-width vst


# --------------------------------------------------------------------------- wrappers
def pack_params(params):
    """One-time weight packing (transposes, bias fold, head fusion, bf16 MXU casts)."""
    H = params["whh"].shape[1]
    assert H == HIDDEN, "heads are nn.Linear(64, ...), so lstm_hidden_dim must be 64"
    wih_t = params["wih"].T.astype(jnp.bfloat16)                 # (D, 4H)
    whh_t = params["whh"].T.astype(jnp.bfloat16)                 # (H, 4H)
    b = (params["bih"] + params["bhh"]).reshape(1, 4 * H).astype(jnp.float32)
    # Fuse both heads into one zero-padded weight/bias (cols 0:3 = class, 3:5 = domain).
    wheads = (jnp.zeros((H, HEAD_PAD), jnp.float32)
              .at[:, 0:3].set(params["wc"].T)
              .at[:, 3:5].set(params["wd"].T)).astype(jnp.bfloat16)
    bheads = (jnp.zeros((1, HEAD_PAD), jnp.float32)
              .at[:, 0:3].set(params["bc"])
              .at[:, 3:5].set(params["bd"]))
    return dict(wih=wih_t, whh=whh_t, b=b, wheads=wheads, bheads=bheads)


def dann_forward(x, packed, alpha=1.0):
    """x: (B, T, D) batch_first.  alpha only affects backward (GRL) -> unused here."""
    del alpha  # gradient reversal is identity in the forward pass
    B, T, D = x.shape
    H = packed["whh"].shape[0]

    out = pl.pallas_call(
        _dann_kernel,
        out_shape=jax.ShapeDtypeStruct((B, T, HEAD_PAD), jnp.float32),
        scratch_shapes=[
            pltpu.VMEM((T, B, 4 * H), jnp.float32),   # time-major pre-projected gates
            pltpu.VMEM((T, B, H), jnp.float32),       # time-major hidden states
        ],
    )(x.astype(jnp.float32), packed["wih"], packed["whh"], packed["b"],
      packed["wheads"], packed["bheads"])

    return out[:, :, 0:3], out[:, :, 3:5]             # cheap slices, fuse into consumers


def init_params(key, D, H):
    ks = jax.random.split(key, 8)
    s = 1.0 / math.sqrt(H)       # PyTorch LSTM init: U(-1/sqrt(H), 1/sqrt(H))
    sl = 1.0 / math.sqrt(64.0)   # PyTorch Linear init: U(-1/sqrt(fan_in), 1/sqrt(fan_in))
    return dict(
        wih=jax.random.uniform(ks[0], (4 * H, D), jnp.float32, -s, s),
        whh=jax.random.uniform(ks[1], (4 * H, H), jnp.float32, -s, s),
        bih=jax.random.uniform(ks[2], (4 * H,), jnp.float32, -s, s),
        bhh=jax.random.uniform(ks[3], (4 * H,), jnp.float32, -s, s),
        wc=jax.random.uniform(ks[4], (3, 64), jnp.float32, -sl, sl),
        bc=jax.random.uniform(ks[5], (3,), jnp.float32, -sl, sl),
        wd=jax.random.uniform(ks[6], (2, 64), jnp.float32, -sl, sl),
        bd=jax.random.uniform(ks[7], (2,), jnp.float32, -sl, sl),
    )


# -------------------------------------------------------------- pure-JAX reference (f32)
def _reference(x, params):
    B, T, D = x.shape
    H = params["whh"].shape[1]
    wih, whh = params["wih"], params["whh"]
    b = params["bih"] + params["bhh"]

    def step(carry, x_t):
        h, c = carry
        gates = x_t @ wih.T + h @ whh.T + b
        i = jax.nn.sigmoid(gates[:, 0 * H:1 * H])
        f = jax.nn.sigmoid(gates[:, 1 * H:2 * H])
        g = jnp.tanh(gates[:, 2 * H:3 * H])
        o = jax.nn.sigmoid(gates[:, 3 * H:4 * H])
        c = f * c + i * g
        h = o * jnp.tanh(c)
        return (h, c), h

    (_, _), hs = jax.lax.scan(step, (jnp.zeros((B, H)), jnp.zeros((B, H))),
                              jnp.transpose(x, (1, 0, 2)))
    feat = jnp.transpose(hs, (1, 0, 2))                          # (B, T, H)
    cl = feat @ params["wc"].T + params["bc"]
    dl = feat @ params["wd"].T + params["bd"]
    return jax.nn.softmax(cl, axis=0), jax.nn.sigmoid(dl)


if __name__ == "__main__":
    B, T, D, H = 8, 8, 16, HIDDEN
    key = jax.random.PRNGKey(0)
    kx, kp = jax.random.split(key)

    x = jax.random.normal(kx, (B, T, D), jnp.float32)
    params = init_params(kp, D, H)
    packed = pack_params(params)          # one-time packing, off the per-call hot path
    alpha = 0.5

    fwd = jax.jit(lambda xi: dann_forward(xi, packed, alpha))
    class_out, domain_out = fwd(x)
    jax.block_until_ready((class_out, domain_out))

    assert class_out.shape == (B, T, 3)
    assert domain_out.shape == (B, T, 2)
    # legacy Softmax() on a 3-D tensor normalizes over dim=0 -> batch columns sum to 1
    assert jnp.allclose(jnp.sum(class_out, axis=0), 1.0, atol=1e-5)
    assert bool(jnp.all((domain_out >= 0.0) & (domain_out <= 1.0)))

    ref_class, ref_domain = _reference(x, params)
    # bf16 MXU operands compound mild rounding across the T=8-step recurrence vs f32 ref.
    assert jnp.allclose(class_out, ref_class, atol=2e-2), float(
        jnp.max(jnp.abs(class_out - ref_class)))
    assert jnp.allclose(domain_out, ref_domain, atol=2e-2), float(
        jnp.max(jnp.abs(domain_out - ref_domain)))

    print("KERNEL_OK")
</pallas_src>

<mosaic_0001>
module attributes {stable_mosaic.version = 11 : i64} {
  func.func @_dann_kernel(%arg0: memref<8x8x16xf32, #tpu.memory_space<vmem>>, %arg1: memref<16x256xbf16, #tpu.memory_space<vmem>>, %arg2: memref<64x256xbf16, #tpu.memory_space<vmem>>, %arg3: memref<1x256xf32, #tpu.memory_space<vmem>>, %arg4: memref<64x128xbf16, #tpu.memory_space<vmem>>, %arg5: memref<1x128xf32, #tpu.memory_space<vmem>>, %arg6: memref<8x8x128xf32, #tpu.memory_space<vmem>>, %arg7: memref<8x8x256xf32, #tpu.memory_space<vmem>>, %arg8: memref<8x8x64xf32, #tpu.memory_space<vmem>>) attributes {dimension_semantics = [], scalar_prefetch = 0 : i64, scratch_operands = 2 : i64, tpu.core_type = #tpu.core_type<tc>} {
    %c0 = arith.constant 0 : index
    %c0_0 = arith.constant 0 : index
    %c0_1 = arith.constant 0 : index
    %0 = vector.load %arg0[%c0, %c0_0, %c0_1] : memref<8x8x16xf32, #tpu.memory_space<vmem>>, vector<8x8x16xf32>
    %1 = vector.shape_cast %0 : vector<8x8x16xf32> to vector<64x16xf32>
    %2 = arith.truncf %1 : vector<64x16xf32> to vector<64x16xbf16>
    %c0_2 = arith.constant 0 : index
    %c0_3 = arith.constant 0 : index
    %3 = vector.load %arg1[%c0_2, %c0_3] : memref<16x256xbf16, #tpu.memory_space<vmem>>, vector<16x256xbf16>
    %cst = arith.constant dense<0.000000e+00> : vector<64x256xf32>
    %4 = tpu.matmul %2, %3, %cst {dimension_numbers = #tpu.dot_dimension_numbers<[1], [0], [0], [1], [0, 0, 1, 1], [], []>} : vector<64x16xbf16>, vector<16x256xbf16>, vector<64x256xf32> -> vector<64x256xf32>
    %c0_4 = arith.constant 0 : index
    %c0_5 = arith.constant 0 : index
    %5 = vector.load %arg3[%c0_4, %c0_5] : memref<1x256xf32, #tpu.memory_space<vmem>>, vector<1x256xf32>
    %6 = vector.broadcast %5 : vector<1x256xf32> to vector<64x256xf32>
    %7 = arith.addf %4, %6 : vector<64x256xf32>
    %8 = vector.shape_cast %7 : vector<64x256xf32> to vector<8x8x256xf32>
    %9 = tpu.transpose %8, [1, 0, 2] : vector<8x8x256xf32> -> vector<8x8x256xf32>
    %c0_6 = arith.constant 0 : index
    %c0_7 = arith.constant 0 : index
    %c0_8 = arith.constant 0 : index
    %10 = vector.load %arg7[%c0_6, %c0_7, %c0_8] : memref<8x8x256xf32, #tpu.memory_space<vmem>>, vector<8x8x256xf32>
    tpu.vector_store %arg7[%c0_6, %c0_7, %c0_8], %9 {strides = array<i32>} : memref<8x8x256xf32, #tpu.memory_space<vmem>>, vector<8x8x256xf32>,
    %11 = tpu.iota {dimensions = array<i32: 1>} : vector<8x256xi32>
    %c128_i32 = arith.constant 128 : i32
    %12 = vector.broadcast %c128_i32 : i32 to vector<8x256xi32>
    %13 = arith.cmpi sge, %11, %12 : vector<8x256xi32>
    %c192_i32 = arith.constant 192 : i32
    %14 = vector.broadcast %c192_i32 : i32 to vector<8x256xi32>
    %15 = arith.cmpi slt, %11, %14 : vector<8x256xi32>
    %16 = arith.andi %13, %15 : vector<8x256xi1>
    %cst_9 = arith.constant 1.000000e+00 : f32
    %cst_10 = arith.constant 5.000000e-01 : f32
    %17 = vector.broadcast %cst_9 : f32 to vector<8x256xf32>
    %18 = vector.broadcast %cst_10 : f32 to vector<8x256xf32>
    %19 = arith.select %16, %17, %18 : vector<8x256xi1>, vector<8x256xf32>
    %c0_11 = arith.constant 0 : index
    %c0_12 = arith.constant 0 : index
    %20 = vector.load %arg2[%c0_11, %c0_12] : memref<64x256xbf16, #tpu.memory_space<vmem>>, vector<64x256xbf16>
    %cst_13 = arith.constant 0.000000e+00 : f32
    %21 = vector.broadcast %cst_13 : f32 to vector<8x64xf32>
    %cst_14 = arith.constant 0.000000e+00 : f32
    %22 = vector.broadcast %cst_14 : f32 to vector<8x64xf32>
    %c0_15 = arith.constant 0 : index
    %c0_16 = arith.constant 0 : index
    %c0_17 = arith.constant 0 : index
    %23 = vector.load %arg7[%c0_15, %c0_16, %c0_17] : memref<8x8x256xf32, #tpu.memory_space<vmem>>, vector<1x8x256xf32>
    %24 = vector.shape_cast %23 : vector<1x8x256xf32> to vector<8x256xf32>
    %25 = arith.truncf %21 : vector<8x64xf32> to vector<8x64xbf16>
    %cst_18 = arith.constant dense<0.000000e+00> : vector<8x256xf32>
    %26 = tpu.matmul %25, %20, %cst_18 {dimension_numbers = #tpu.dot_dimension_numbers<[1], [0], [0], [1], [0, 0, 1, 1], [], []>} : vector<8x64xbf16>, vector<64x256xbf16>, vector<8x256xf32> -> vector<8x256xf32>
    %27 = arith.addf %24, %26 : vector<8x256xf32>
    %28 = arith.mulf %27, %19 : vector<8x256xf32>
    %29 = math.tanh %28 : vector<8x256xf32>
    %cst_19 = arith.constant 5.000000e-01 : f32
    %30 = vector.broadcast %cst_19 : f32 to vector<8x256xf32>
    %31 = arith.mulf %30, %29 : vector<8x256xf32>
    %cst_20 = arith.constant 5.000000e-01 : f32
    %32 = vector.broadcast %cst_20 : f32 to vector<8x256xf32>
    %33 = arith.addf %31, %32 : vector<8x256xf32>
    %34 = arith.select %16, %29, %33 : vector<8x256xi1>, vector<8x256xf32>
    %35 = vector.extract_strided_slice %34 {offsets = [0, 0], sizes = [8, 64], strides = [1, 1]} : vector<8x256xf32> to vector<8x64xf32>
    %36 = vector.extract_strided_slice %34 {offsets = [0, 64], sizes = [8, 64], strides = [1, 1]} : vector<8x256xf32> to vector<8x64xf32>
    %37 = vector.extract_strided_slice %34 {offsets = [0, 128], sizes = [8, 64], strides = [1, 1]} : vector<8x256xf32> to vector<8x64xf32>
    %38 = vector.extract_strided_slice %34 {offsets = [0, 192], sizes = [8, 64], strides = [1, 1]} : vector<8x256xf32> to vector<8x64xf32>
    %39 = arith.mulf %36, %22 : vector<8x64xf32>
    %40 = arith.mulf %35, %37 : vector<8x64xf32>
    %41 = arith.addf %39, %40 : vector<8x64xf32>
    %42 = math.tanh %41 : vector<8x64xf32>
    %43 = arith.mulf %38, %42 : vector<8x64xf32>
    %c0_21 = arith.constant 0 : index
    %c0_22 = arith.constant 0 : index
    %c0_23 = arith.constant 0 : index
    %44 = vector.load %arg8[%c0_21, %c0_22, %c0_23] : memref<8x8x64xf32, #tpu.memory_space<vmem>>, vector<1x8x64xf32>
    %45 = vector.shape_cast %44 : vector<1x8x64xf32> to vector<8x64xf32>
    %46 = vector.shape_cast %43 : vector<8x64xf32> to vector<1x8x64xf32>
    tpu.vector_store %arg8[%c0_21, %c0_22, %c0_23], %46 {strides = array<i32>} : memref<8x8x64xf32, #tpu.memory_space<vmem>>, vector<1x8x64xf32>,
    %c1 = arith.constant 1 : index
    %c0_24 = arith.constant 0 : index
    %c0_25 = arith.constant 0 : index
    %47 = vector.load %arg7[%c1, %c0_24, %c0_25] : memref<8x8x256xf32, #tpu.memory_space<vmem>>, vector<1x8x256xf32>
    %48 = vector.shape_cast %47 : vector<1x8x256xf32> to vector<8x256xf32>
    %49 = arith.truncf %43 : vector<8x64xf32> to vector<8x64xbf16>
    %cst_26 = arith.constant dense<0.000000e+00> : vector<8x256xf32>
    %50 = tpu.matmul %49, %20, %cst_26 {dimension_numbers = #tpu.dot_dimension_numbers<[1], [0], [0], [1], [0, 0, 1, 1], [], []>} : vector<8x64xbf16>, vector<64x256xbf16>, vector<8x256xf32> -> vector<8x256xf32>
    %51 = arith.addf %48, %50 : vector<8x256xf32>
    %52 = arith.mulf %51, %19 : vector<8x256xf32>
    %53 = math.tanh %52 : vector<8x256xf32>
    %cst_27 = arith.constant 5.000000e-01 : f32
    %54 = vector.broadcast %cst_27 : f32 to vector<8x256xf32>
    %55 = arith.mulf %54, %53 : vector<8x256xf32>
    %cst_28 = arith.constant 5.000000e-01 : f32
    %56 = vector.broadcast %cst_28 : f32 to vector<8x256xf32>
    %57 = arith.addf %55, %56 : vector<8x256xf32>
    %58 = arith.select %16, %53, %57 : vector<8x256xi1>, vector<8x256xf32>
    %59 = vector.extract_strided_slice %58 {offsets = [0, 0], sizes = [8, 64], strides = [1, 1]} : vector<8x256xf32> to vector<8x64xf32>
    %60 = vector.extract_strided_slice %58 {offsets = [0, 64], sizes = [8, 64], strides = [1, 1]} : vector<8x256xf32> to vector<8x64xf32>
    %61 = vector.extract_strided_slice %58 {offsets = [0, 128], sizes = [8, 64], strides = [1, 1]} : vector<8x256xf32> to vector<8x64xf32>
    %62 = vector.extract_strided_slice %58 {offsets = [0, 192], sizes = [8, 64], strides = [1, 1]} : vector<8x256xf32> to vector<8x64xf32>
    %63 = arith.mulf %60, %41 : vector<8x64xf32>
    %64 = arith.mulf %59, %61 : vector<8x64xf32>
    %65 = arith.addf %63, %64 : vector<8x64xf32>
    %66 = math.tanh %65 : vector<8x64xf32>
    %67 = arith.mulf %62, %66 : vector<8x64xf32>
    %c1_29 = arith.constant 1 : index
    %c0_30 = arith.constant 0 : index
    %c0_31 = arith.constant 0 : index
    %68 = vector.load %arg8[%c1_29, %c0_30, %c0_31] : memref<8x8x64xf32, #tpu.memory_space<vmem>>, vector<1x8x64xf32>
    %69 = vector.shape_cast %68 : vector<1x8x64xf32> to vector<8x64xf32>
    %70 = vector.shape_cast %67 : vector<8x64xf32> to vector<1x8x64xf32>
    tpu.vector_store %arg8[%c1_29, %c0_30, %c0_31], %70 {strides = array<i32>} : memref<8x8x64xf32, #tpu.memory_space<vmem>>, vector<1x8x64xf32>,
    %c2 = arith.constant 2 : index
    %c0_32 = arith.constant 0 : index
    %c0_33 = arith.constant 0 : index
    %71 = vector.load %arg7[%c2, %c0_32, %c0_33] : memref<8x8x256xf32, #tpu.memory_space<vmem>>, vector<1x8x256xf32>
    %72 = vector.shape_cast %71 : vector<1x8x256xf32> to vector<8x256xf32>
    %73 = arith.truncf %67 : vector<8x64xf32> to vector<8x64xbf16>
    %cst_34 = arith.constant dense<0.000000e+00> : vector<8x256xf32>
    %74 = tpu.matmul %73, %20, %cst_34 {dimension_numbers = #tpu.dot_dimension_numbers<[1], [0], [0], [1], [0, 0, 1, 1], [], []>} : vector<8x64xbf16>, vector<64x256xbf16>, vector<8x256xf32> -> vector<8x256xf32>
    %75 = arith.addf %72, %74 : vector<8x256xf32>
    %76 = arith.mulf %75, %19 : vector<8x256xf32>
    %77 = math.tanh %76 : vector<8x256xf32>
    %cst_35 = arith.constant 5.000000e-01 : f32
    %78 = vector.broadcast %cst_35 : f32 to vector<8x256xf32>
    %79 = arith.mulf %78, %77 : vector<8x256xf32>
    %cst_36 = arith.constant 5.000000e-01 : f32
    %80 = vector.broadcast %cst_36 : f32 to vector<8x256xf32>
    %81 = arith.addf %79, %80 : vector<8x256xf32>
    %82 = arith.select %16, %77, %81 : vector<8x256xi1>, vector<8x256xf32>
    %83 = vector.extract_strided_slice %82 {offsets = [0, 0], sizes = [8, 64], strides = [1, 1]} : vector<8x256xf32> to vector<8x64xf32>
    %84 = vector.extract_strided_slice %82 {offsets = [0, 64], sizes = [8, 64], strides = [1, 1]} : vector<8x256xf32> to vector<8x64xf32>
    %85 = vector.extract_strided_slice %82 {offsets = [0, 128], sizes = [8, 64], strides = [1, 1]} : vector<8x256xf32> to vector<8x64xf32>
    %86 = vector.extract_strided_slice %82 {offsets = [0, 192], sizes = [8, 64], strides = [1, 1]} : vector<8x256xf32> to vector<8x64xf32>
    %87 = arith.mulf %84, %65 : vector<8x64xf32>
    %88 = arith.mulf %83, %85 : vector<8x64xf32>
    %89 = arith.addf %87, %88 : vector<8x64xf32>
    %90 = math.tanh %89 : vector<8x64xf32>
    %91 = arith.mulf %86, %90 : vector<8x64xf32>
    %c2_37 = arith.constant 2 : index
    %c0_38 = arith.constant 0 : index
    %c0_39 = arith.constant 0 : index
    %92 = vector.load %arg8[%c2_37, %c0_38, %c0_39] : memref<8x8x64xf32, #tpu.memory_space<vmem>>, vector<1x8x64xf32>
    %93 = vector.shape_cast %92 : vector<1x8x64xf32> to vector<8x64xf32>
    %94 = vector.shape_cast %91 : vector<8x64xf32> to vector<1x8x64xf32>
    tpu.vector_store %arg8[%c2_37, %c0_38, %c0_39], %94 {strides = array<i32>} : memref<8x8x64xf32, #tpu.memory_space<vmem>>, vector<1x8x64xf32>,
    %c3 = arith.constant 3 : index
    %c0_40 = arith.constant 0 : index
    %c0_41 = arith.constant 0 : index
    %95 = vector.load %arg7[%c3, %c0_40, %c0_41] : memref<8x8x256xf32, #tpu.memory_space<vmem>>, vector<1x8x256xf32>
    %96 = vector.shape_cast %95 : vector<1x8x256xf32> to vector<8x256xf32>
    %97 = arith.truncf %91 : vector<8x64xf32> to vector<8x64xbf16>
    %cst_42 = arith.constant dense<0.000000e+00> : vector<8x256xf32>
    %98 = tpu.matmul %97, %20, %cst_42 {dimension_numbers = #tpu.dot_dimension_numbers<[1], [0], [0], [1], [0, 0, 1, 1], [], []>} : vector<8x64xbf16>, vector<64x256xbf16>, vector<8x256xf32> -> vector<8x256xf32>
    %99 = arith.addf %96, %98 : vector<8x256xf32>
    %100 = arith.mulf %99, %19 : vector<8x256xf32>
    %101 = math.tanh %100 : vector<8x256xf32>
    %cst_43 = arith.constant 5.000000e-01 : f32
    %102 = vector.broadcast %cst_43 : f32 to vector<8x256xf32>
    %103 = arith.mulf %102, %101 : vector<8x256xf32>
    %cst_44 = arith.constant 5.000000e-01 : f32
    %104 = vector.broadcast %cst_44 : f32 to vector<8x256xf32>
    %105 = arith.addf %103, %104 : vector<8x256xf32>
    %106 = arith.select %16, %101, %105 : vector<8x256xi1>, vector<8x256xf32>
    %107 = vector.extract_strided_slice %106 {offsets = [0, 0], sizes = [8, 64], strides = [1, 1]} : vector<8x256xf32> to vector<8x64xf32>
    %108 = vector.extract_strided_slice %106 {offsets = [0, 64], sizes = [8, 64], strides = [1, 1]} : vector<8x256xf32> to vector<8x64xf32>
    %109 = vector.extract_strided_slice %106 {offsets = [0, 128], sizes = [8, 64], strides = [1, 1]} : vector<8x256xf32> to vector<8x64xf32>
    %110 = vector.extract_strided_slice %106 {offsets = [0, 192], sizes = [8, 64], strides = [1, 1]} : vector<8x256xf32> to vector<8x64xf32>
    %111 = arith.mulf %108, %89 : vector<8x64xf32>
    %112 = arith.mulf %107, %109 : vector<8x64xf32>
    %113 = arith.addf %111, %112 : vector<8x64xf32>
    %114 = math.tanh %113 : vector<8x64xf32>
    %115 = arith.mulf %110, %114 : vector<8x64xf32>
    %c3_45 = arith.constant 3 : index
    %c0_46 = arith.constant 0 : index
    %c0_47 = arith.constant 0 : index
    %116 = vector.load %arg8[%c3_45, %c0_46, %c0_47] : memref<8x8x64xf32, #tpu.memory_space<vmem>>, vector<1x8x64xf32>
    %117 = vector.shape_cast %116 : vector<1x8x64xf32> to vector<8x64xf32>
    %118 = vector.shape_cast %115 : vector<8x64xf32> to vector<1x8x64xf32>
    tpu.vector_store %arg8[%c3_45, %c0_46, %c0_47], %118 {strides = array<i32>} : memref<8x8x64xf32, #tpu.memory_space<vmem>>, vector<1x8x64xf32>,
    %c4 = arith.constant 4 : index
    %c0_48 = arith.constant 0 : index
    %c0_49 = arith.constant 0 : index
    %119 = vector.load %arg7[%c4, %c0_48, %c0_49] : memref<8x8x256xf32, #tpu.memory_space<vmem>>, vector<1x8x256xf32>
    %120 = vector.shape_cast %119 : vector<1x8x256xf32> to vector<8x256xf32>
    %121 = arith.truncf %115 : vector<8x64xf32> to vector<8x64xbf16>
    %cst_50 = arith.constant dense<0.000000e+00> : vector<8x256xf32>
    %122 = tpu.matmul %121, %20, %cst_50 {dimension_numbers = #tpu.dot_dimension_numbers<[1], [0], [0], [1], [0, 0, 1, 1], [], []>} : vector<8x64xbf16>, vector<64x256xbf16>, vector<8x256xf32> -> vector<8x256xf32>
    %123 = arith.addf %120, %122 : vector<8x256xf32>
    %124 = arith.mulf %123, %19 : vector<8x256xf32>
    %125 = math.tanh %124 : vector<8x256xf32>
    %cst_51 = arith.constant 5.000000e-01 : f32
    %126 = vector.broadcast %cst_51 : f32 to vector<8x256xf32>
    %127 = arith.mulf %126, %125 : vector<8x256xf32>
    %cst_52 = arith.constant 5.000000e-01 : f32
    %128 = vector.broadcast %cst_52 : f32 to vector<8x256xf32>
    %129 = arith.addf %127, %128 : vector<8x256xf32>
    %130 = arith.select %16, %125, %129 : vector<8x256xi1>, vector<8x256xf32>
    %131 = vector.extract_strided_slice %130 {offsets = [0, 0], sizes = [8, 64], strides = [1, 1]} : vector<8x256xf32> to vector<8x64xf32>
    %132 = vector.extract_strided_slice %130 {offsets = [0, 64], sizes = [8, 64], strides = [1, 1]} : vector<8x256xf32> to vector<8x64xf32>
    %133 = vector.extract_strided_slice %130 {offsets = [0, 128], sizes = [8, 64], strides = [1, 1]} : vector<8x256xf32> to vector<8x64xf32>
    %134 = vector.extract_strided_slice %130 {offsets = [0, 192], sizes = [8, 64], strides = [1, 1]} : vector<8x256xf32> to vector<8x64xf32>
    %135 = arith.mulf %132, %113 : vector<8x64xf32>
    %136 = arith.mulf %131, %133 : vector<8x64xf32>
    %137 = arith.addf %135, %136 : vector<8x64xf32>
    %138 = math.tanh %137 : vector<8x64xf32>
    %139 = arith.mulf %134, %138 : vector<8x64xf32>
    %c4_53 = arith.constant 4 : index
    %c0_54 = arith.constant 0 : index
    %c0_55 = arith.constant 0 : index
    %140 = vector.load %arg8[%c4_53, %c0_54, %c0_55] : memref<8x8x64xf32, #tpu.memory_space<vmem>>, vector<1x8x64xf32>
    %141 = vector.shape_cast %140 : vector<1x8x64xf32> to vector<8x64xf32>
    %142 = vector.shape_cast %139 : vector<8x64xf32> to vector<1x8x64xf32>
    tpu.vector_store %arg8[%c4_53, %c0_54, %c0_55], %142 {strides = array<i32>} : memref<8x8x64xf32, #tpu.memory_space<vmem>>, vector<1x8x64xf32>,
    %c5 = arith.constant 5 : index
    %c0_56 = arith.constant 0 : index
    %c0_57 = arith.constant 0 : index
    %143 = vector.load %arg7[%c5, %c0_56, %c0_57] : memref<8x8x256xf32, #tpu.memory_space<vmem>>, vector<1x8x256xf32>
    %144 = vector.shape_cast %143 : vector<1x8x256xf32> to vector<8x256xf32>
    %145 = arith.truncf %139 : vector<8x64xf32> to vector<8x64xbf16>
    %cst_58 = arith.constant dense<0.000000e+00> : vector<8x256xf32>
    %146 = tpu.matmul %145, %20, %cst_58 {dimension_numbers = #tpu.dot_dimension_numbers<[1], [0], [0], [1], [0, 0, 1, 1], [], []>} : vector<8x64xbf16>, vector<64x256xbf16>, vector<8x256xf32> -> vector<8x256xf32>
    %147 = arith.addf %144, %146 : vector<8x256xf32>
    %148 = arith.mulf %147, %19 : vector<8x256xf32>
    %149 = math.tanh %148 : vector<8x256xf32>
    %cst_59 = arith.constant 5.000000e-01 : f32
    %150 = vector.broadcast %cst_59 : f32 to vector<8x256xf32>
    %151 = arith.mulf %150, %149 : vector<8x256xf32>
    %cst_60 = arith.constant 5.000000e-01 : f32
    %152 = vector.broadcast %cst_60 : f32 to vector<8x256xf32>
    %153 = arith.addf %151, %152 : vector<8x256xf32>
    %154 = arith.select %16, %149, %153 : vector<8x256xi1>, vector<8x256xf32>
    %155 = vector.extract_strided_slice %154 {offsets = [0, 0], sizes = [8, 64], strides = [1, 1]} : vector<8x256xf32> to vector<8x64xf32>
    %156 = vector.extract_strided_slice %154 {offsets = [0, 64], sizes = [8, 64], strides = [1, 1]} : vector<8x256xf32> to vector<8x64xf32>
    %157 = vector.extract_strided_slice %154 {offsets = [0, 128], sizes = [8, 64], strides = [1, 1]} : vector<8x256xf32> to vector<8x64xf32>
    %158 = vector.extract_strided_slice %154 {offsets = [0, 192], sizes = [8, 64], strides = [1, 1]} : vector<8x256xf32> to vector<8x64xf32>
    %159 = arith.mulf %156, %137 : vector<8x64xf32>
    %160 = arith.mulf %155, %157 : vector<8x64xf32>
    %161 = arith.addf %159, %160 : vector<8x64xf32>
    %162 = math.tanh %161 : vector<8x64xf32>
    %163 = arith.mulf %158, %162 : vector<8x64xf32>
    %c5_61 = arith.constant 5 : index
    %c0_62 = arith.constant 0 : index
    %c0_63 = arith.constant 0 : index
    %164 = vector.load %arg8[%c5_61, %c0_62, %c0_63] : memref<8x8x64xf32, #tpu.memory_space<vmem>>, vector<1x8x64xf32>
    %165 = vector.shape_cast %164 : vector<1x8x64xf32> to vector<8x64xf32>
    %166 = vector.shape_cast %163 : vector<8x64xf32> to vector<1x8x64xf32>
    tpu.vector_store %arg8[%c5_61, %c0_62, %c0_63], %166 {strides = array<i32>} : memref<8x8x64xf32, #tpu.memory_space<vmem>>, vector<1x8x64xf32>,
    %c6 = arith.constant 6 : index
    %c0_64 = arith.constant 0 : index
    %c0_65 = arith.constant 0 : index
    %167 = vector.load %arg7[%c6, %c0_64, %c0_65] : memref<8x8x256xf32, #tpu.memory_space<vmem>>, vector<1x8x256xf32>
    %168 = vector.shape_cast %167 : vector<1x8x256xf32> to vector<8x256xf32>
    %169 = arith.truncf %163 : vector<8x64xf32> to vector<8x64xbf16>
    %cst_66 = arith.constant dense<0.000000e+00> : vector<8x256xf32>
    %170 = tpu.matmul %169, %20, %cst_66 {dimension_numbers = #tpu.dot_dimension_numbers<[1], [0], [0], [1], [0, 0, 1, 1], [], []>} : vector<8x64xbf16>, vector<64x256xbf16>, vector<8x256xf32> -> vector<8x256xf32>
    %171 = arith.addf %168, %170 : vector<8x256xf32>
    %172 = arith.mulf %171, %19 : vector<8x256xf32>
    %173 = math.tanh %172 : vector<8x256xf32>
    %cst_67 = arith.constant 5.000000e-01 : f32
    %174 = vector.broadcast %cst_67 : f32 to vector<8x256xf32>
    %175 = arith.mulf %174, %173 : vector<8x256xf32>
    %cst_68 = arith.constant 5.000000e-01 : f32
    %176 = vector.broadcast %cst_68 : f32 to vector<8x256xf32>
    %177 = arith.addf %175, %176 : vector<8x256xf32>
    %178 = arith.select %16, %173, %177 : vector<8x256xi1>, vector<8x256xf32>
    %179 = vector.extract_strided_slice %178 {offsets = [0, 0], sizes = [8, 64], strides = [1, 1]} : vector<8x256xf32> to vector<8x64xf32>
    %180 = vector.extract_strided_slice %178 {offsets = [0, 64], sizes = [8, 64], strides = [1, 1]} : vector<8x256xf32> to vector<8x64xf32>
    %181 = vector.extract_strided_slice %178 {offsets = [0, 128], sizes = [8, 64], strides = [1, 1]} : vector<8x256xf32> to vector<8x64xf32>
    %182 = vector.extract_strided_slice %178 {offsets = [0, 192], sizes = [8, 64], strides = [1, 1]} : vector<8x256xf32> to vector<8x64xf32>
    %183 = arith.mulf %180, %161 : vector<8x64xf32>
    %184 = arith.mulf %179, %181 : vector<8x64xf32>
    %185 = arith.addf %183, %184 : vector<8x64xf32>
    %186 = math.tanh %185 : vector<8x64xf32>
    %187 = arith.mulf %182, %186 : vector<8x64xf32>
    %c6_69 = arith.constant 6 : index
    %c0_70 = arith.constant 0 : index
    %c0_71 = arith.constant 0 : index
    %188 = vector.load %arg8[%c6_69, %c0_70, %c0_71] : memref<8x8x64xf32, #tpu.memory_space<vmem>>, vector<1x8x64xf32>
    %189 = vector.shape_cast %188 : vector<1x8x64xf32> to vector<8x64xf32>
    %190 = vector.shape_cast %187 : vector<8x64xf32> to vector<1x8x64xf32>
    tpu.vector_store %arg8[%c6_69, %c0_70, %c0_71], %190 {strides = array<i32>} : memref<8x8x64xf32, #tpu.memory_space<vmem>>, vector<1x8x64xf32>,
    %c7 = arith.constant 7 : index
    %c0_72 = arith.constant 0 : index
    %c0_73 = arith.constant 0 : index
    %191 = vector.load %arg7[%c7, %c0_72, %c0_73] : memref<8x8x256xf32, #tpu.memory_space<vmem>>, vector<1x8x256xf32>
    %192 = vector.shape_cast %191 : vector<1x8x256xf32> to vector<8x256xf32>
    %193 = arith.truncf %187 : vector<8x64xf32> to vector<8x64xbf16>
    %cst_74 = arith.constant dense<0.000000e+00> : vector<8x256xf32>
    %194 = tpu.matmul %193, %20, %cst_74 {dimension_numbers = #tpu.dot_dimension_numbers<[1], [0], [0], [1], [0, 0, 1, 1], [], []>} : vector<8x64xbf16>, vector<64x256xbf16>, vector<8x256xf32> -> vector<8x256xf32>
    %195 = arith.addf %192, %194 : vector<8x256xf32>
    %196 = arith.mulf %195, %19 : vector<8x256xf32>
    %197 = math.tanh %196 : vector<8x256xf32>
    %cst_75 = arith.constant 5.000000e-01 : f32
    %198 = vector.broadcast %cst_75 : f32 to vector<8x256xf32>
    %199 = arith.mulf %198, %197 : vector<8x256xf32>
    %cst_76 = arith.constant 5.000000e-01 : f32
    %200 = vector.broadcast %cst_76 : f32 to vector<8x256xf32>
    %201 = arith.addf %199, %200 : vector<8x256xf32>
    %202 = arith.select %16, %197, %201 : vector<8x256xi1>, vector<8x256xf32>
    %203 = vector.extract_strided_slice %202 {offsets = [0, 0], sizes = [8, 64], strides = [1, 1]} : vector<8x256xf32> to vector<8x64xf32>
    %204 = vector.extract_strided_slice %202 {offsets = [0, 64], sizes = [8, 64], strides = [1, 1]} : vector<8x256xf32> to vector<8x64xf32>
    %205 = vector.extract_strided_slice %202 {offsets = [0, 128], sizes = [8, 64], strides = [1, 1]} : vector<8x256xf32> to vector<8x64xf32>
    %206 = vector.extract_strided_slice %202 {offsets = [0, 192], sizes = [8, 64], strides = [1, 1]} : vector<8x256xf32> to vector<8x64xf32>
    %207 = arith.mulf %204, %185 : vector<8x64xf32>
    %208 = arith.mulf %203, %205 : vector<8x64xf32>
    %209 = arith.addf %207, %208 : vector<8x64xf32>
    %210 = math.tanh %209 : vector<8x64xf32>
    %211 = arith.mulf %206, %210 : vector<8x64xf32>
    %c7_77 = arith.constant 7 : index
    %c0_78 = arith.constant 0 : index
    %c0_79 = arith.constant 0 : index
    %212 = vector.load %arg8[%c7_77, %c0_78, %c0_79] : memref<8x8x64xf32, #tpu.memory_space<vmem>>, vector<1x8x64xf32>
    %213 = vector.shape_cast %212 : vector<1x8x64xf32> to vector<8x64xf32>
    %214 = vector.shape_cast %211 : vector<8x64xf32> to vector<1x8x64xf32>
    tpu.vector_store %arg8[%c7_77, %c0_78, %c0_79], %214 {strides = array<i32>} : memref<8x8x64xf32, #tpu.memory_space<vmem>>, vector<1x8x64xf32>,
    %c0_80 = arith.constant 0 : index
    %c0_81 = arith.constant 0 : index
    %c0_82 = arith.constant 0 : index
    %215 = vector.load %arg8[%c0_80, %c0_81, %c0_82] : memref<8x8x64xf32, #tpu.memory_space<vmem>>, vector<8x8x64xf32>
    %216 = vector.shape_cast %215 : vector<8x8x64xf32> to vector<64x64xf32>
    %217 = arith.truncf %216 : vector<64x64xf32> to vector<64x64xbf16>
    %c0_83 = arith.constant 0 : index
    %c0_84 = arith.constant 0 : index
    %218 = vector.load %arg4[%c0_83, %c0_84] : memref<64x128xbf16, #tpu.memory_space<vmem>>, vector<64x128xbf16>
    %cst_85 = arith.constant dense<0.000000e+00> : vector<64x128xf32>
    %219 = tpu.matmul %217, %218, %cst_85 {dimension_numbers = #tpu.dot_dimension_numbers<[1], [0], [0], [1], [0, 0, 1, 1], [], []>} : vector<64x64xbf16>, vector<64x128xbf16>, vector<64x128xf32> -> vector<64x128xf32>
    %c0_86 = arith.constant 0 : index
    %c0_87 = arith.constant 0 : index
    %220 = vector.load %arg5[%c0_86, %c0_87] : memref<1x128xf32, #tpu.memory_space<vmem>>, vector<1x128xf32>
    %221 = vector.broadcast %220 : vector<1x128xf32> to vector<64x128xf32>
    %222 = arith.addf %219, %221 : vector<64x128xf32>
    %223 = vector.shape_cast %222 : vector<64x128xf32> to vector<8x8x128xf32>
    %cst_88 = arith.constant dense<0xFF800000> : vector<8x128xf32>
    %224 = vector.multi_reduction <maximumf>, %223, %cst_88 [1] : vector<8x8x128xf32> to vector<8x128xf32>
    %225 = vector.shape_cast %224 : vector<8x128xf32> to vector<8x1x128xf32>
    %226 = vector.broadcast %225 : vector<8x1x128xf32> to vector<8x8x128xf32>
    %227 = arith.subf %223, %226 : vector<8x8x128xf32>
    %228 = math.exp %227 : vector<8x8x128xf32>
    %cst_89 = arith.constant dense<0.000000e+00> : vector<8x128xf32>
    %229 = vector.multi_reduction <add>, %228, %cst_89 [1] : vector<8x8x128xf32> to vector<8x128xf32>
    %230 = vector.shape_cast %229 : vector<8x128xf32> to vector<8x1x128xf32>
    %231 = vector.broadcast %230 : vector<8x1x128xf32> to vector<8x8x128xf32>
    %232 = arith.divf %228, %231 : vector<8x8x128xf32>
    %233 = arith.negf %223 : vector<8x8x128xf32>
    %234 = math.exp %233 : vector<8x8x128xf32>
    %cst_90 = arith.constant 1.000000e+00 : f32
    %235 = vector.broadcast %cst_90 : f32 to vector<8x8x128xf32>
    %236 = arith.addf %235, %234 : vector<8x8x128xf32>
    %237 = arith.divf %235, %236 : vector<8x8x128xf32>
    %238 = tpu.iota {dimensions = array<i32: 2>} : vector<8x8x128xi32>
    %c3_i32 = arith.constant 3 : i32
    %239 = vector.broadcast %c3_i32 : i32 to vector<8x8x128xi32>
    %240 = arith.cmpi slt, %238, %239 : vector<8x8x128xi32>
    %241 = arith.select %240, %232, %237 : vector<8x8x128xi1>, vector<8x8x128xf32>
    %242 = tpu.transpose %241, [1, 0, 2] : vector<8x8x128xf32> -> vector<8x8x128xf32>
    %c0_91 = arith.constant 0 : index
    %c0_92 = arith.constant 0 : index
    %c0_93 = arith.constant 0 : index
    %243 = vector.load %arg6[%c0_91, %c0_92, %c0_93] : memref<8x8x128xf32, #tpu.memory_space<vmem>>, vector<8x8x128xf32>
    tpu.vector_store %arg6[%c0_91, %c0_92, %c0_93], %242 {strides = array<i32>} : memref<8x8x128xf32, #tpu.memory_space<vmem>>, vector<8x8x128xf32>,
    return
  }
}

</mosaic_0001>

<bundles_post_ra>
// kernel: _lambda_.1
= control target key start
LH: loop header
LB: loop body
LE: loop exit
PB: predicated region body
PF: predicated region fallthrough
CT: control target
= control target key end

     0   :  { %v1781_v1 = vmov 0   ;;  %vm60_vm0 = vcmask 130048   ;;  %v40_v23 = vlaneseq  ;;  %v1782_v27 = vmov 1983009808   ;;  %s2349_s1 = inlined_call_operand.vmem [shape: bf16[16,256], index: 1, kind: input, shape index: {}]   ;;  %s2350_s0 = inlined_call_operand.vmem [shape: f32[8,8,16], index: 0, kind: input, shape index: {}]   ;;  %s2351_s2 = inlined_call_operand.vmem [shape: bf16[64,256], index: 2, kind: input, shape index: {}]   ;;  %s2352_s3 = inlined_call_operand.vmem [shape: f32[1,256], index: 3, kind: input, shape index: {}]   ;;  %s2353_s4 = inlined_call_operand.vmem [shape: bf16[64,128], index: 4, kind: input, shape index: {}]   ;;  %s2354_s5 = inlined_call_operand.vmem [shape: f32[1,128], index: 5, kind: input, shape index: {}]   ;;  %s2355_s6 = inlined_call_operand.vmem [shape: f32[8,8,128], index: 6, kind: output, shape index: {}]  }
   0x1   :  { %v1650_v0 = vld [vmem:[%s2349_s1 + $0x4] ss:$8 sps:$4 sm:$0xff]   ;;  %105 = vmatprep.mubr.bf16.mxu0 %v1781_v1  ;;  %125 = vmatprep.mubr.bf16.mxu1 %v1781_v1  ;;  %v1652_v2 = vld [vmem:[%s2349_s1] ss:$8 sps:$4 sm:$0xff]   ;;  %v1854_v11 = vld [vmem:[%s2351_s2 + $0x14] ss:$8 sps:$4 sm:$0xff]   ;;  %v149_v28 = vunpack.c.l.s4 %v1782_v27 }
   0x2   :  { %v24_v3 = vld [vmem:[%s2350_s0] sm:$0xff]  ;;  %v25_v4 = vld [vmem:[%s2350_s0 + $0x8] sm:$0xff]  ;;  %73 = vmatprep.subr.bf16.mxu0 %v1650_v0  ;;  %1643 = vmatprep.subr.bf16.mxu1 %v1650_v0  ;;  %v26_v12 = vld [vmem:[%s2350_s0 + $0x10] sm:$0xff]  ;;  %v41_v24 = vshrl.u32 %v40_v23, 7  ;;  %v1929_v25 = vand.u32 127, %v40_v23  ;;  %v1784_v50 = vmov 0.5  }
   0x3   :  { %v32_v5 = vpack.c.bf16 %v25_v4, %v24_v3  ;;  %v28_v6 = vld [vmem:[%s2350_s0 + $0x20] sm:$0xff]  ;;  %v29_v7 = vld [vmem:[%s2350_s0 + $0x28] sm:$0xff]  ;;  %74 = vmatpush1.bf16.msra.mxu0 %v1652_v2  ;;  %1644 = vmatpush1.bf16.msra.mxu1 %v1652_v2  ;;  %v27_v13 = vld [vmem:[%s2350_s0 + $0x18] sm:$0xff]  ;;  %v1783_v29 = vmov 1934713408   ;;  %v150_v42 = vunpack.c.0.s8 %v149_v28  ;;  %vm495_vm2 = vcmask 523264  }
   0x4   :  { %v34_v8 = vpack.c.bf16 %v29_v7, %v28_v6  ;;  %v1844_v9 = vld [vmem:[%s2351_s2 + $0x4] ss:$8 sps:$4 sm:$0xff]   ;;  %v1849_v10 = vld [vmem:[%s2351_s2] ss:$8 sps:$4 sm:$0xff]   ;;  %v30_v14 = vld [vmem:[%s2350_s0 + $0x30] sm:$0xff]  ;;  %v33_v18 = vpack.c.bf16 %v27_v13, %v26_v12  ;;  %v213_v30 = vunpack.c.l.s4 %v1783_v29  ;;  %v42_v32 = vsub.s32 0, %v41_v24 }
   0x5   :  { %499 = vmatprep.subr.bf16.mxu1 %v1844_v9  ;;  %654 = vmatprep.subr.bf16.mxu0 %v1844_v9  ;;  %v31_v15 = vld [vmem:[%s2350_s0 + $0x38] sm:$0xff]  ;;  %v1884_v17 = vld [vmem:[%s2351_s2 + $0x24] ss:$8 sps:$4 sm:$0xff]   ;;  %v1892_v20 = vld [vmem:[%s2351_s2 + $0x20] ss:$8 sps:$4 sm:$0xff]   ;;  %v1932_v35 = vadd.s32 128, %v1929_v25  ;;  %v1938_v46 = vsub.s32 %v150_v42, %v41_v24 }
   0x6   :  { %1583 = vmatmul.mubr.msk.bf16.vlgmr.msra.gmra.mrb[0].mxu0 %vm60_vm0, %v32_v5  ;;  %1585 = vmatmul.mubr.msk.bf16.vlgmr.msra.gmra.mrb[0].mxu1 %vm60_vm0, %v34_v8  ;;  %v1877_v16 = vld [vmem:[%s2351_s2 + $0x10] ss:$8 sps:$4 sm:$0xff]   ;;  %v35_v19 = vpack.c.bf16 %v31_v15, %v30_v14  ;;  %v1898_v21 = vld [vmem:[%s2351_s2 + $0x34] ss:$8 sps:$4 sm:$0xff]   ;;  %v38_v36 = vld [vmem:[%s2352_s3] sm:$0x3]  ;;  %v214_v43 = vunpack.c.0.s8 %v213_v30 }
   0x7   :  { %500 = vmatpush1.bf16.msra.mxu1 %v1849_v10  ;;  %115 = vmatprep.mubr.bf16.mxu0 %v1781_v1  ;;  %v1907_v22 = vld [vmem:[%s2351_s2 + $0x30] ss:$8 sps:$4 sm:$0xff]   ;;  %v46_v37 = vsub.s32 1, %v41_v24  ;;  %v43_v44 = vrot.slane %v38_v36, %v42_v32  ;;  %vm440_vm1 = vcmp.lt.s32.totalorder %v1932_v35, 192  ;;  %s1785_s3 = smov 64   ;;  %vm1424_vm3 = vcmp.lt.s32.totalorder %v1929_v25, 3 }
   0x8   :  { %135 = vmatprep.mubr.bf16.mxu1 %v1781_v1  ;;  %501 = vmatprep.subr.bf16.mxu1 %v1854_v11  ;;  %v1940_v47 = vsub.s32 %v214_v43, %v41_v24  ;;  %v1944_v51 = vsel %vm440_vm1, 1.0, %v1784_v50 }
   0x9   :  { %655 = vmatpush1.bf16.msra.mxu0 %v1849_v10  ;;  %v47_v45 = vrot.slane %v38_v36, %v46_v37 }
   0xa   :  { %656 = vmatprep.subr.bf16.mxu0 %v1854_v11 }
   0xb   :  { %502 = vmatpush1.bf16.msra.mxu1 %v1877_v16 }
   0xc   :  { %503 = vmatprep.subr.bf16.mxu1 %v1884_v17 }
   0xd   :  { %657 = vmatpush1.bf16.msra.mxu0 %v1877_v16 }
   0xe   :  { %1584 = vmatmul.mubr.msk.bf16.gmra.mrb[4].mxu0 %vm60_vm0, %v33_v18  ;;  %1586 = vmatmul.mubr.msk.bf16.gmra.mrb[4].mxu1 %vm60_vm0, %v35_v19 }
   0xf   :  { %504 = vmatpush1.bf16.msra.mxu1 %v1892_v20  ;;  %531 = vmatprep.mubr.bf16.mxu1 %v1781_v1 }
  0x10   :  { %505 = vmatprep.subr.bf16.mxu1 %v1898_v21  ;;  %658 = vmatprep.subr.bf16.mxu0 %v1884_v17 }
  0x11   :  { %659 = vmatpush1.bf16.msra.mxu0 %v1892_v20  ;;  %686 = vmatprep.mubr.bf16.mxu0 %v1781_v1 }
  0x12   :  { %660 = vmatprep.subr.bf16.mxu0 %v1898_v21 }
  0x13   :  { %506 = vmatpush1.bf16.msra.mxu1 %v1907_v22 }
  0x14   :  { %576 = vmatprep.subr.bf16.mxu1 %v1844_v9 }
  0x15   :  { %661 = vmatpush1.bf16.msra.mxu0 %v1907_v22 }
  0x16   :  { %532 = vmatmul.mubr.bf16.vlgmr.msra.gmra.mrb[8].mxu1 %v1781_v1  ;;  %810 = vmatprep.subr.bf16.mxu0 %v1844_v9 }
  0x17   :  { %577 = vmatpush1.bf16.msra.mxu1 %v1849_v10  ;;  %608 = vmatprep.mubr.bf16.mxu1 %v1781_v1 }
  0x18   :  { %578 = vmatprep.subr.bf16.mxu1 %v1854_v11 }
  0x1b   :  { %579 = vmatpush1.bf16.msra.mxu1 %v1877_v16 }
  0x1c   :  { %580 = vmatprep.subr.bf16.mxu1 %v1884_v17 }
  0x1f   :  { %581 = vmatpush1.bf16.msra.mxu1 %v1892_v20 }
  0x20   :  { %582 = vmatprep.subr.bf16.mxu1 %v1898_v21 }
  0x23   :  { %583 = vmatpush1.bf16.msra.mxu1 %v1907_v22 }
  0x24   :  { %732 = vmatprep.subr.bf16.mxu1 %v1844_v9 }
  0xd9   :  { %v107_v26 = vpop.f32.mrb[0].mxu0  ;;  %v127_v31 = vpop.f32.mrb[0].mxu1 }
  0xda   :  { %v109_v33 = vpop.f32.mrb[1].mxu0  ;;  %v129_v34 = vpop.f32.mrb[1].mxu1  ;;  %v108_v52 = vadd.f32 %v107_v26, %v43_v44  ;;  %v128_v53 = vadd.f32 %v127_v31, %v43_v44 }
  0xdb   :  { %v111_v38 = vpop.f32.mrb[2].mxu0  ;;  %v131_v39 = vpop.f32.mrb[2].mxu1  ;;  %v110_v58 = vadd.f32 %v109_v33, %v47_v45  ;;  %v130_v59 = vadd.f32 %v129_v34, %v47_v45 }
  0xdc   :  { %v113_v40 = vpop.f32.mrb[3].mxu0  ;;  %v133_v41 = vpop.f32.mrb[3].mxu1  ;;  %v112_v14 = vadd.f32 %v111_v38, %v43_v44  ;;  %v132_v15 = vadd.f32 %v131_v39, %v43_v44 }
  0xdd   :  { %v114_v18 = vadd.f32 %v113_v40, %v47_v45  ;;  %v134_v19 = vadd.f32 %v133_v41, %v47_v45 }
  0xe1   :  { %v117_v48 = vpop.f32.mrb[4].mxu0  ;;  %v137_v49 = vpop.f32.mrb[4].mxu1 }
  0xe2   :  { %v118_v54 = vadd.f32 %v117_v48, %v43_v44  ;;  %v138_v55 = vadd.f32 %v137_v49, %v43_v44  ;;  %v119_v56 = vpop.f32.mrb[5].mxu0  ;;  %v139_v57 = vpop.f32.mrb[5].mxu1 }
  0xe3   :  { %v120_v60 = vadd.f32 %v119_v56, %v47_v45  ;;  %v140_v61 = vadd.f32 %v139_v57, %v47_v45  ;;  %v121_v62 = vpop.f32.mrb[6].mxu0  ;;  %v141_v63 = vpop.f32.mrb[6].mxu1 }
  0xe4   :  { %v146_v0 = vcombine.low %v108_v52, %v118_v54  ;;  %v147_v2 = vcombine.high %v108_v52, %v118_v54  ;;  %v178_v3 = vcombine.low %v128_v53, %v138_v55  ;;  %v179_v4 = vcombine.high %v128_v53, %v138_v55  ;;  %v123_v5 = vpop.f32.mrb[7].mxu0  ;;  %v143_v6 = vpop.f32.mrb[7].mxu1 }
  0xe5   :  { %v282_v7 = vcombine.low %v110_v58, %v120_v60  ;;  %v283_v8 = vcombine.high %v110_v58, %v120_v60  ;;  %v314_v12 = vcombine.low %v130_v59, %v140_v61  ;;  %v315_v13 = vcombine.high %v130_v59, %v140_v61 }
  0xe6   :  { %v154_v23 = vrot.slane %v146_v0, %v1938_v46  ;;  %v1948_v24 = vrot.slane %v147_v2, %v1938_v46  ;;  %v186_v26 = vrot.slane %v178_v3, %v1938_v46  ;;  %v1952_v27 = vrot.slane %v179_v4, %v1938_v46 }
  0xe7   :  { %v122_v28 = vadd.f32 %v121_v62, %v43_v44  ;;  %v142_v29 = vadd.f32 %v141_v63, %v43_v44  ;;  %v124_v30 = vadd.f32 %v123_v5, %v47_v45  ;;  %v144_v31 = vadd.f32 %v143_v6, %v47_v45 }
  0xe8   :  { %v290_v32 = vrot.slane %v282_v7, %v1938_v46  ;;  %v1956_v33 = vrot.slane %v283_v8, %v1938_v46  ;;  %v322_v34 = vrot.slane %v314_v12, %v1938_v46  ;;  %v1960_v36 = vrot.slane %v315_v13, %v1938_v46 }
  0xe9   :  { %v533_v37 = vpop.f32.mrb[8].mxu1  ;;  %v162_v38 = vcombine.low %v112_v14, %v122_v28  ;;  %v163_v39 = vcombine.high %v112_v14, %v122_v28  ;;  %v194_v40 = vcombine.low %v132_v15, %v142_v29  ;;  %v195_v41 = vcombine.high %v132_v15, %v142_v29 }
  0xea   :  { %v535_v42 = vpop.f32.mrb[9].mxu1  ;;  %v298_v43 = vcombine.low %v114_v18, %v124_v30  ;;  %v299_v44 = vcombine.high %v114_v18, %v124_v30  ;;  %v330_v48 = vcombine.low %v134_v19, %v144_v31  ;;  %v331_v45 = vcombine.high %v134_v19, %v144_v31 }
  0xeb   :  { %v537_v49 = vpop.f32.mrb[10].mxu1  ;;  %v170_v50 = vrot.slane %v162_v38, %v1938_v46  ;;  %v177_v52 = vrot.slane %v163_v39, %v1938_v46  ;;  %v202_v53 = vrot.slane %v194_v40, %v1938_v46  ;;  %v209_v54 = vrot.slane %v195_v41, %v1938_v46 }
  0xec   :  { %v538_v55 = vpop.f32.mrb[11].mxu1  ;;  %v306_v56 = vrot.slane %v298_v43, %v1938_v46  ;;  %v313_v57 = vrot.slane %v299_v44, %v1938_v46  ;;  %v338_v58 = vrot.slane %v330_v48, %v1938_v46  ;;  %v345_v59 = vrot.slane %v331_v45, %v1938_v46 }
  0xed   :  { %v210_v60 = vcombine.low %v154_v23, %v170_v50  ;;  %v242_v61 = vcombine.low %v186_v26, %v202_v53  ;;  %v211_v62 = vcombine.high %v154_v23, %v170_v50  ;;  %v243_v63 = vcombine.high %v186_v26, %v202_v53 }
  0xee   :  { %v346_v0 = vcombine.low %v290_v32, %v306_v56  ;;  %v378_v2 = vcombine.low %v322_v34, %v338_v58  ;;  %v347_v3 = vcombine.high %v290_v32, %v306_v56  ;;  %v379_v4 = vcombine.high %v322_v34, %v338_v58 }
  0xef   :  { %v1971_v5 = vrot.slane %v210_v60, %v1940_v47  ;;  %v1974_v6 = vrot.slane %v242_v61, %v1940_v47  ;;  %v1977_v7 = vrot.slane %v211_v62, %v1940_v47  ;;  %v1980_v8 = vrot.slane %v243_v63, %v1940_v47 }
  0xf0   :  { %v1983_v12 = vrot.slane %v346_v0, %v1940_v47  ;;  %v1986_v13 = vrot.slane %v378_v2, %v1940_v47  ;;  %v1989_v14 = vrot.slane %v347_v3, %v1940_v47  ;;  %v1992_v15 = vrot.slane %v379_v4, %v1940_v47 }
  0xf1   :  { %v274_v18 = vcombine.low %v1971_v5, %v1974_v6  ;;  %v275_v19 = vcombine.high %v1971_v5, %v1974_v6  ;;  %v276_v23 = vcombine.low %v1977_v7, %v1980_v8  ;;  %v277_v26 = vcombine.high %v1977_v7, %v1980_v8 }
  0xf2   :  { %v410_v28 = vcombine.low %v1983_v12, %v1986_v13  ;;  %v411_v29 = vcombine.high %v1983_v12, %v1986_v13  ;;  %v412_v30 = vcombine.low %v1989_v14, %v1992_v15  ;;  %v413_v31 = vcombine.high %v1989_v14, %v1992_v15 }
  0xf3   :  { %v540_v32 = vadd.f32 %v533_v37, %v274_v18  ;;  %v226_v34 = vcombine.low %v1948_v24, %v177_v52  ;;  %v258_v38 = vcombine.low %v1952_v27, %v209_v54  ;;  %v362_v39 = vcombine.low %v1956_v33, %v313_v57 }
  0xf4   :  { %v541_v40 = vadd.f32 %v535_v42, %v410_v28  ;;  %v394_v41 = vcombine.low %v1960_v36, %v345_v59  ;;  %v227_v43 = vcombine.high %v1948_v24, %v177_v52  ;;  %v259_v44 = vcombine.high %v1952_v27, %v209_v54 }
  0xf5   :  { %v542_v48 = vmul.f32 0.5, %v540_v32  ;;  %v2017_v45 = vrot.slane %v226_v34, %v1940_v47  ;;  %v2020_v49 = vrot.slane %v258_v38, %v1940_v47  ;;  %v2023_v37 = vrot.slane %v362_v39, %v1940_v47 }
  0xf6   :  { %v543_v50 = vmul.f32 %v541_v40, %v1944_v51  ;;  %v2027_v42 = vrot.slane %v394_v41, %v1940_v47  ;;  %v2030_v53 = vrot.slane %v227_v43, %v1940_v47  ;;  %v2033_v24 = vrot.slane %v259_v44, %v1940_v47 }
  0xf7   :  { %1669 = vtanh.f32 %v542_v48  ;;  %v278_v27 = vcombine.low %v2017_v45, %v2020_v49  ;;  %v279_v52 = vcombine.high %v2017_v45, %v2020_v49  ;;  %v363_v54 = vcombine.high %v1956_v33, %v313_v57 }
  0xf8   :  { %1671 = vtanh.f32 %v543_v50  ;;  %v414_v55 = vcombine.low %v2023_v37, %v2027_v42  ;;  %v415_v56 = vcombine.high %v2023_v37, %v2027_v42  ;;  %v280_v58 = vcombine.low %v2030_v53, %v2033_v24 }
  0xf9   :  { %v2047_v60 = vrot.slane %v363_v54, %v1940_v47  ;;  %v395_v61 = vcombine.high %v1960_v36, %v345_v59  ;;  %v281_v62 = vcombine.high %v2030_v53, %v2033_v24  ;;  %v1666_v53 = vld [vmem:[%s2353_s4 + $0x8] sm:$0xff]  }
  0xfb   :  { %v2053_v33 = vrot.slane %v395_v61, %v1940_v47 }
  0xfd   :  { %v416_v57 = vcombine.low %v2047_v60, %v2053_v33  ;;  %v417_v63 = vcombine.high %v2047_v60, %v2053_v33 }
 0x101   :  { %v1670_v0 = vpop.eup %1669 }
 0x102   :  { %v1672_v2 = vpop.eup %1671  ;;  %v546_v3 = vmul.f32 0.5, %v1670_v0 }
 0x103   :  { %v547_v4 = vmul.f32 0.5, %v1672_v2 }
 0x104   :  { %v548_v28 = vadd.f32 0.5, %v546_v3 }
 0x105   :  { %v549_v18 = vadd.f32 0.5, %v547_v4 }
 0x106   :  { %v552_v32 = vmul.f32 0.0, %v548_v28 }
 0x107   :  { %v551_v36 = vsel %vm440_vm1, %v1672_v2, %v549_v18 }
 0x108   :  { %v553_v59 = vmul.f32 %v551_v36, %v548_v28 }
 0x10a   :  { %555 = vrot.lane.b32.xlu0 %v553_v59, %s1785_s3 }
 0x17c   :  { %v556_v34 = vpop.permute.xlu0 %555 }
 0x17d   :  { %v558_v38 = vadd.f32 %v556_v34, %v552_v32 }
 0x17f   :  { %1673 = vtanh.f32 %v558_v38 }
 0x189   :  { %v1674_v39 = vpop.eup %1673 }
 0x18a   :  { %v2062_v40 = vmul.f32 %v1674_v39, %v551_v36 }
 0x18c   :  { %v569_v41 = vpack.c.bf16 %v2062_v40, %v2062_v40 }
 0x18e   :  { %571 = vrot.lane.b32.xlu0 %v569_v41, %s1785_s3 }
 0x200   :  { %v572_v43 = vpop.permute.xlu0 %571 }
 0x201   :  { %1595 = vmatmul.mubr.msk.bf16.vlgmr.msra.gmra.mrb[12].mxu1 %vm495_vm2, %v572_v43 }
 0x202   :  { %733 = vmatpush1.bf16.msra.mxu1 %v1849_v10  ;;  %764 = vmatprep.mubr.bf16.mxu1 %v1781_v1 }
 0x203   :  { %734 = vmatprep.subr.bf16.mxu1 %v1854_v11 }
 0x206   :  { %735 = vmatpush1.bf16.msra.mxu1 %v1877_v16 }
 0x207   :  { %736 = vmatprep.subr.bf16.mxu1 %v1884_v17 }
 0x20a   :  { %737 = vmatpush1.bf16.msra.mxu1 %v1892_v20 }
 0x20b   :  { %738 = vmatprep.subr.bf16.mxu1 %v1898_v21 }
 0x20e   :  { %739 = vmatpush1.bf16.msra.mxu1 %v1907_v22 }
 0x20f   :  { %888 = vmatprep.subr.bf16.mxu1 %v1844_v9 }
 0x2d4   :  { %v610_v44 = vpop.f32.mrb[12].mxu1 }
 0x2d5   :  { %v617_v48 = vadd.f32 %v610_v44, %v275_v19  ;;  %v612_v50 = vpop.f32.mrb[13].mxu1 }
 0x2d6   :  { %v618_v54 = vadd.f32 %v612_v50, %v411_v29  ;;  %v614_v61 = vpop.f32.mrb[14].mxu1 }
 0x2d7   :  { %v619_v0 = vmul.f32 0.5, %v617_v48  ;;  %v615_v2 = vpop.f32.mrb[15].mxu1 }
 0x2d8   :  { %v620_v3 = vmul.f32 %v618_v54, %v1944_v51 }
 0x2d9   :  { %1675 = vtanh.f32 %v619_v0 }
 0x2da   :  { %1677 = vtanh.f32 %v620_v3 }
 0x2e3   :  { %v1676_v4 = vpop.eup %1675 }
 0x2e4   :  { %v1678_v18 = vpop.eup %1677  ;;  %v623_v28 = vmul.f32 0.5, %v1676_v4 }
 0x2e5   :  { %v624_v36 = vmul.f32 0.5, %v1678_v18 }
 0x2e6   :  { %v625_v32 = vadd.f32 0.5, %v623_v28 }
 0x2e7   :  { %v626_v59 = vadd.f32 0.5, %v624_v36 }
 0x2e8   :  { %v629_v12 = vmul.f32 %v625_v32, %v558_v38 }
 0x2e9   :  { %v628_v5 = vsel %vm440_vm1, %v1678_v18, %v626_v59 }
 0x2ea   :  { %v630_v6 = vmul.f32 %v628_v5, %v625_v32 }
 0x2ec   :  { %632 = vrot.lane.b32.xlu1 %v630_v6, %s1785_s3 }
 0x35e   :  { %v633_v13 = vpop.permute.xlu1 %632 }
 0x35f   :  { %v635_v19 = vadd.f32 %v633_v13, %v629_v12 }
 0x361   :  { %1679 = vtanh.f32 %v635_v19 }
 0x36b   :  { %v1680_v29 = vpop.eup %1679 }
 0x36c   :  { %v2087_v34 = vmul.f32 %v1680_v29, %v628_v5 }
 0x36e   :  { %v647_v39 = vpack.c.bf16 %v2087_v34, %v2087_v34 }
 0x370   :  { %649 = vrot.lane.b32.xlu1 %v647_v39, %s1785_s3 }
 0x3e2   :  { %v650_v41 = vpop.permute.xlu1 %649 }
 0x3e3   :  { %1596 = vmatmul.mubr.msk.bf16.vlgmr.msra.gmra.mrb[8].mxu0 %vm495_vm2, %v650_v41 }
 0x3e4   :  { %811 = vmatpush1.bf16.msra.mxu0 %v1849_v10  ;;  %842 = vmatprep.mubr.bf16.mxu0 %v1781_v1 }
 0x3e5   :  { %812 = vmatprep.subr.bf16.mxu0 %v1854_v11 }
 0x3e8   :  { %813 = vmatpush1.bf16.msra.mxu0 %v1877_v16 }
 0x3e9   :  { %814 = vmatprep.subr.bf16.mxu0 %v1884_v17 }
 0x3ec   :  { %815 = vmatpush1.bf16.msra.mxu0 %v1892_v20 }
 0x3ed   :  { %816 = vmatprep.subr.bf16.mxu0 %v1898_v21 }
 0x3f0   :  { %817 = vmatpush1.bf16.msra.mxu0 %v1907_v22 }
 0x3f1   :  { %966 = vmatprep.subr.bf16.mxu0 %v1844_v9 }
 0x4b6   :  { %v688_v38 = vpop.f32.mrb[8].mxu0 }
 0x4b7   :  { %v695_v43 = vadd.f32 %v688_v38, %v276_v23  ;;  %v690_v44 = vpop.f32.mrb[9].mxu0 }
 0x4b8   :  { %v696_v48 = vadd.f32 %v690_v44, %v412_v30  ;;  %v692_v50 = vpop.f32.mrb[10].mxu0 }
 0x4b9   :  { %v697_v54 = vmul.f32 0.5, %v695_v43  ;;  %v693_v61 = vpop.f32.mrb[11].mxu0 }
 0x4ba   :  { %v698_v0 = vmul.f32 %v696_v48, %v1944_v51 }
 0x4bb   :  { %1681 = vtanh.f32 %v697_v54 }
 0x4bc   :  { %1683 = vtanh.f32 %v698_v0 }
 0x4c5   :  { %v1682_v2 = vpop.eup %1681 }
 0x4c6   :  { %v1684_v3 = vpop.eup %1683  ;;  %v701_v4 = vmul.f32 0.5, %v1682_v2 }
 0x4c7   :  { %v702_v18 = vmul.f32 0.5, %v1684_v3 }
 0x4c8   :  { %v703_v36 = vadd.f32 0.5, %v701_v4 }
 0x4c9   :  { %v704_v28 = vadd.f32 0.5, %v702_v18 }
 0x4ca   :  { %v707_v30 = vmul.f32 %v703_v36, %v635_v19 }
 0x4cb   :  { %v706_v23 = vsel %vm440_vm1, %v1684_v3, %v704_v28 }
 0x4cc   :  { %v708_v59 = vmul.f32 %v706_v23, %v703_v36 }
 0x4ce   :  { %710 = vrot.lane.b32.xlu0 %v708_v59, %s1785_s3 }
 0x540   :  { %v711_v32 = vpop.permute.xlu0 %710 }
 0x541   :  { %v713_v5 = vadd.f32 %v711_v32, %v707_v30 }
 0x543   :  { %1685 = vtanh.f32 %v713_v5 }
 0x54d   :  { %v1686_v6 = vpop.eup %1685 }
 0x54e   :  { %v2112_v12 = vmul.f32 %v1686_v6, %v706_v23 }
 0x550   :  { %v725_v13 = vpack.c.bf16 %v2112_v12, %v2112_v12 }
 0x552   :  { %727 = vrot.lane.b32.xlu1 %v725_v13, %s1785_s3 }
 0x5c4   :  { %v728_v29 = vpop.permute.xlu1 %727 }
 0x5c5   :  { %1597 = vmatmul.mubr.msk.bf16.vlgmr.msra.gmra.mrb[16].mxu1 %vm495_vm2, %v728_v29 }
 0x5c6   :  { %889 = vmatpush1.bf16.msra.mxu1 %v1849_v10  ;;  %920 = vmatprep.mubr.bf16.mxu1 %v1781_v1 }
 0x5c7   :  { %890 = vmatprep.subr.bf16.mxu1 %v1854_v11 }
 0x5ca   :  { %891 = vmatpush1.bf16.msra.mxu1 %v1877_v16 }
 0x5cb   :  { %892 = vmatprep.subr.bf16.mxu1 %v1884_v17 }
 0x5ce   :  { %893 = vmatpush1.bf16.msra.mxu1 %v1892_v20 }
 0x5cf   :  { %894 = vmatprep.subr.bf16.mxu1 %v1898_v21 }
 0x5d2   :  { %895 = vmatpush1.bf16.msra.mxu1 %v1907_v22 }
 0x5d3   :  { %1044 = vmatprep.subr.bf16.mxu1 %v1844_v9 }
 0x698   :  { %v766_v19 = vpop.f32.mrb[16].mxu1 }
 0x699   :  { %v773_v39 = vadd.f32 %v766_v19, %v277_v26  ;;  %v768_v41 = vpop.f32.mrb[17].mxu1 }
 0x69a   :  { %v774_v38 = vadd.f32 %v768_v41, %v413_v31  ;;  %v770_v43 = vpop.f32.mrb[18].mxu1 }
 0x69b   :  { %v775_v44 = vmul.f32 0.5, %v773_v39  ;;  %v771_v48 = vpop.f32.mrb[19].mxu1 }
 0x69c   :  { %v776_v50 = vmul.f32 %v774_v38, %v1944_v51 }
 0x69d   :  { %1687 = vtanh.f32 %v775_v44 }
 0x69e   :  { %1689 = vtanh.f32 %v776_v50 }
 0x6a7   :  { %v1688_v54 = vpop.eup %1687 }
 0x6a8   :  { %v1690_v61 = vpop.eup %1689  ;;  %v779_v9 = vmul.f32 0.5, %v1688_v54 }
 0x6a9   :  { %v780_v0 = vmul.f32 0.5, %v1690_v61 }
 0x6aa   :  { %v781_v3 = vadd.f32 0.5, %v779_v9 }
 0x6ab   :  { %v782_v2 = vadd.f32 0.5, %v780_v0 }
 0x6ac   :  { %v785_v14 = vmul.f32 %v781_v3, %v713_v5 }
 0x6ad   :  { %v784_v7 = vsel %vm440_vm1, %v1690_v61, %v782_v2 }
 0x6ae   :  { %v786_v8 = vmul.f32 %v784_v7, %v781_v3 }
 0x6b0   :  { %788 = vrot.lane.b32.xlu0 %v786_v8, %s1785_s3 }
 0x722   :  { %v789_v15 = vpop.permute.xlu0 %788 }
 0x723   :  { %v791_v26 = vadd.f32 %v789_v15, %v785_v14 }
 0x725   :  { %1691 = vtanh.f32 %v791_v26 }
 0x72f   :  { %v1692_v31 = vpop.eup %1691 }
 0x730   :  { %v2137_v4 = vmul.f32 %v1692_v31, %v784_v7 }
 0x732   :  { %v803_v18 = vpack.c.bf16 %v2137_v4, %v2137_v4 }
 0x734   :  { %805 = vrot.lane.b32.xlu1 %v803_v18, %s1785_s3 }
 0x7a6   :  { %v806_v28 = vpop.permute.xlu1 %805 }
 0x7a7   :  { %1598 = vmatmul.mubr.msk.bf16.vlgmr.msra.gmra.mrb[12].mxu0 %vm495_vm2, %v806_v28 }
 0x7a8   :  { %967 = vmatpush1.bf16.msra.mxu0 %v1849_v10  ;;  %998 = vmatprep.mubr.bf16.mxu0 %v1781_v1 }
 0x7a9   :  { %968 = vmatprep.subr.bf16.mxu0 %v1854_v11 }
 0x7ac   :  { %969 = vmatpush1.bf16.msra.mxu0 %v1877_v16 }
 0x7ad   :  { %970 = vmatprep.subr.bf16.mxu0 %v1884_v17 }
 0x7b0   :  { %971 = vmatpush1.bf16.msra.mxu0 %v1892_v20 }
 0x7b1   :  { %972 = vmatprep.subr.bf16.mxu0 %v1898_v21 }
 0x7b4   :  { %973 = vmatpush1.bf16.msra.mxu0 %v1907_v22 }
 0x87a   :  { %v844_v36 = vpop.f32.mrb[12].mxu0 }
 0x87b   :  { %v851_v23 = vadd.f32 %v844_v36, %v278_v27  ;;  %v846_v59 = vpop.f32.mrb[13].mxu0 }
 0x87c   :  { %v852_v30 = vadd.f32 %v846_v59, %v414_v55  ;;  %v848_v32 = vpop.f32.mrb[14].mxu0 }
 0x87d   :  { %v853_v5 = vmul.f32 0.5, %v851_v23  ;;  %v849_v6 = vpop.f32.mrb[15].mxu0 }
 0x87e   :  { %v854_v13 = vmul.f32 %v852_v30, %v1944_v51 }
 0x87f   :  { %1693 = vtanh.f32 %v853_v5 }
 0x880   :  { %1695 = vtanh.f32 %v854_v13 }
 0x889   :  { %v1694_v29 = vpop.eup %1693 }
 0x88a   :  { %v1696_v19 = vpop.eup %1695  ;;  %v857_v39 = vmul.f32 0.5, %v1694_v29 }
 0x88b   :  { %v858_v41 = vmul.f32 0.5, %v1696_v19 }
 0x88c   :  { %v859_v43 = vadd.f32 0.5, %v857_v39 }
 0x88d   :  { %v860_v38 = vadd.f32 0.5, %v858_v41 }
 0x88e   :  { %v863_v55 = vmul.f32 %v859_v43, %v791_v26 }
 0x88f   :  { %v862_v27 = vsel %vm440_vm1, %v1696_v19, %v860_v38 }
 0x890   :  { %v864_v44 = vmul.f32 %v862_v27, %v859_v43 }
 0x892   :  { %866 = vrot.lane.b32.xlu0 %v864_v44, %s1785_s3 }
 0x904   :  { %v867_v48 = vpop.permute.xlu0 %866 }
 0x905   :  { %v869_v50 = vadd.f32 %v867_v48, %v863_v55 }
 0x907   :  { %1697 = vtanh.f32 %v869_v50 }
 0x911   :  { %v1698_v54 = vpop.eup %1697 }
 0x912   :  { %v2161_v61 = vmul.f32 %v1698_v54, %v862_v27 }
 0x914   :  { %v881_v9 = vpack.c.bf16 %v2161_v61, %v2161_v61 }
 0x916   :  { %883 = vrot.lane.b32.xlu1 %v881_v9, %s1785_s3 }
 0x988   :  { %v884_v0 = vpop.permute.xlu1 %883 }
 0x989   :  { %1599 = vmatmul.mubr.msk.bf16.vlgmr.msra.gmra.mrb[20].mxu1 %vm495_vm2, %v884_v0 }
 0x98a   :  { %1045 = vmatpush1.bf16.msra.mxu1 %v1849_v10  ;;  %1076 = vmatprep.mubr.bf16.mxu1 %v1781_v1 }
 0x98b   :  { %1046 = vmatprep.subr.bf16.mxu1 %v1854_v11 }
 0x98e   :  { %1047 = vmatpush1.bf16.msra.mxu1 %v1877_v16 }
 0x98f   :  { %1048 = vmatprep.subr.bf16.mxu1 %v1884_v17 }
 0x992   :  { %1049 = vmatpush1.bf16.msra.mxu1 %v1892_v20 }
 0x993   :  { %1050 = vmatprep.subr.bf16.mxu1 %v1898_v21 }
 0x996   :  { %1051 = vmatpush1.bf16.msra.mxu1 %v1907_v22 }
 0xa5c   :  { %v922_v2 = vpop.f32.mrb[20].mxu1 }
 0xa5d   :  { %v929_v3 = vadd.f32 %v922_v2, %v279_v52  ;;  %v924_v10 = vpop.f32.mrb[21].mxu1 }
 0xa5e   :  { %v930_v1 = vadd.f32 %v924_v10, %v415_v56  ;;  %v926_v11 = vpop.f32.mrb[22].mxu1 }
 0xa5f   :  { %v931_v16 = vmul.f32 0.5, %v929_v3  ;;  %v927_v7 = vpop.f32.mrb[23].mxu1 }
 0xa60   :  { %v932_v17 = vmul.f32 %v930_v1, %v1944_v51 }
 0xa61   :  { %1699 = vtanh.f32 %v931_v16 }
 0xa62   :  { %1701 = vtanh.f32 %v932_v17  ;;  %v1665_v17 = vld [vmem:[%s2353_s4] sm:$0xff]  }
 0xa63   :  { %1627 = vmatprep.subr.bf16.mxu0 %v1665_v17 }
 0xa6b   :  { %v1700_v20 = vpop.eup %1699 }
 0xa6c   :  { %v1702_v21 = vpop.eup %1701  ;;  %v935_v22 = vmul.f32 0.5, %v1700_v20 }
 0xa6d   :  { %v936_v8 = vmul.f32 0.5, %v1702_v21 }
 0xa6e   :  { %v937_v15 = vadd.f32 0.5, %v935_v22 }
 0xa6f   :  { %v938_v14 = vadd.f32 0.5, %v936_v8  ;;  %v1668_v8 = vld [vmem:[%s2353_s4 + $0x18] sm:$0xff]  }
 0xa70   :  { %v941_v37 = vmul.f32 %v937_v15, %v869_v50 }
 0xa71   :  { %v940_v45 = vsel %vm440_vm1, %v1702_v21, %v938_v14 }
 0xa72   :  { %v942_v49 = vmul.f32 %v940_v45, %v937_v15 }
 0xa74   :  { %944 = vrot.lane.b32.xlu0 %v942_v49, %s1785_s3 }
 0xae6   :  { %v945_v42 = vpop.permute.xlu0 %944 }
 0xae7   :  { %v947_v52 = vadd.f32 %v945_v42, %v941_v37 }
 0xae9   :  { %1703 = vtanh.f32 %v947_v52 }
 0xaf3   :  { %v1704_v56 = vpop.eup %1703 }
 0xaf4   :  { %v2185_v26 = vmul.f32 %v1704_v56, %v940_v45 }
 0xaf6   :  { %v959_v31 = vpack.c.bf16 %v2185_v26, %v2185_v26 }
 0xaf8   :  { %961 = vrot.lane.b32.xlu1 %v959_v31, %s1785_s3 }
 0xb6a   :  { %v962_v18 = vpop.permute.xlu1 %961 }
 0xb6b   :  { %1600 = vmatmul.mubr.msk.bf16.vlgmr.msra.gmra.mrb[16].mxu0 %vm495_vm2, %v962_v18 }
 0xb6c   :  { %1628 = vmatpush3.bf16.msra.mxu0 %v1665_v17 }
 0xb6d   :  { %1629 = vmatprep.subr.bf16.mxu0 %v1666_v53 }
 0xb70   :  { %1630 = vmatpush3.bf16.msra.mxu0 %v1666_v53 }
 0xc3e   :  { %v1000_v28 = vpop.f32.mrb[16].mxu0 }
 0xc3f   :  { %v1007_v36 = vadd.f32 %v1000_v28, %v280_v58  ;;  %v1002_v23 = vpop.f32.mrb[17].mxu0 }
 0xc40   :  { %v1008_v59 = vadd.f32 %v1002_v23, %v416_v57  ;;  %v1004_v30 = vpop.f32.mrb[18].mxu0 }
 0xc41   :  { %v1009_v32 = vmul.f32 0.5, %v1007_v36  ;;  %v1005_v5 = vpop.f32.mrb[19].mxu0 }
 0xc42   :  { %v1010_v6 = vmul.f32 %v1008_v59, %v1944_v51 }
 0xc43   :  { %1705 = vtanh.f32 %v1009_v32 }
 0xc44   :  { %1707 = vtanh.f32 %v1010_v6  ;;  %v2254_v6 = vld [vmem:[%s2354_s5] ss:$0 sm:$0xff] }
 0xc4d   :  { %v1706_v13 = vpop.eup %1705 }
 0xc4e   :  { %v1708_v29 = vpop.eup %1707  ;;  %v1013_v19 = vmul.f32 0.5, %v1706_v13 }
 0xc4f   :  { %v1014_v39 = vmul.f32 0.5, %v1708_v29 }
 0xc50   :  { %v1015_v38 = vadd.f32 0.5, %v1013_v19 }
 0xc51   :  { %v1016_v41 = vadd.f32 0.5, %v1014_v39 }
 0xc52   :  { %v1019_v57 = vmul.f32 %v1015_v38, %v947_v52 }
 0xc53   :  { %v1018_v58 = vsel %vm440_vm1, %v1708_v29, %v1016_v41 }
 0xc54   :  { %v1020_v43 = vmul.f32 %v1018_v58, %v1015_v38 }
 0xc56   :  { %1022 = vrot.lane.b32.xlu0 %v1020_v43, %s1785_s3 }
 0xcc8   :  { %v1023_v27 = vpop.permute.xlu0 %1022 }
 0xcc9   :  { %v1025_v44 = vadd.f32 %v1023_v27, %v1019_v57 }
 0xccb   :  { %1709 = vtanh.f32 %v1025_v44 }
 0xcd5   :  { %v1710_v55 = vpop.eup %1709 }
 0xcd6   :  { %v1027_v48 = vmul.f32 %v1710_v55, %v1018_v58 }
 0xcd8   :  { %v1037_v50 = vpack.c.bf16 %v1027_v48, %v1027_v48 }
 0xcda   :  { %1039 = vrot.lane.b32.xlu1 %v1037_v50, %s1785_s3 }
 0xcde   :  { %562 = vrot.lane.b32.xlu1 %v2062_v40, %s1785_s3 }
 0xce2   :  { %717 = vrot.lane.b32.xlu1 %v2112_v12, %s1785_s3 }
 0xce6   :  { %873 = vrot.lane.b32.xlu1 %v2161_v61, %s1785_s3 }
 0xcea   :  { %1029 = vrot.lane.b32.xlu1 %v1027_v48, %s1785_s3 }
 0xd4c   :  { %v1040_v54 = vpop.permute.xlu1 %1039 }
 0xd4d   :  { %1601 = vmatmul.mubr.msk.bf16.vlgmr.msra.gmra.mrb[24].mxu1 %vm495_vm2, %v1040_v54 }
 0xd50   :  { %v563_v9 = vpop.permute.xlu1 %562 }
 0xd51   :  { %565 = vst.msk [vmem:[#allocation3] sm:$0xff] %vm495_vm2, %v563_v9 }
 0xd54   :  { %v718_v0 = vpop.permute.xlu1 %717 }
 0xd55   :  { %721 = vst.msk [vmem:[#allocation3 + $0x10] sm:$0xff] %vm495_vm2, %v718_v0 }
 0xd58   :  { %v874_v2 = vpop.permute.xlu1 %873  ;;  %v1112_v42 = vld [vmem:[#allocation3] sm:$0xff] }
 0xd59   :  { %877 = vst.msk [vmem:[#allocation3 + $0x20] sm:$0xff] %vm495_vm2, %v874_v2 }
 0xd5c   :  { %v1030_v40 = vpop.permute.xlu1 %1029 }
 0xd5d   :  { %1033 = vst.msk [vmem:[#allocation3 + $0x30] sm:$0xff] %vm495_vm2, %v1030_v40 }
 0xd60   :  { %v1116_v28 = vld [vmem:[#allocation3 + $0x20] sm:$0xff] }
 0xd64   :  { %v1118_v30 = vld [vmem:[#allocation3 + $0x30] sm:$0xff] }
 0xe20   :  { %v1078_v12 = vpop.f32.mrb[24].mxu1 }
 0xe21   :  { %v1085_v61 = vadd.f32 %v1078_v12, %v281_v62  ;;  %v1080_v3 = vpop.f32.mrb[25].mxu1 }
 0xe22   :  { %v1086_v10 = vadd.f32 %v1080_v3, %v417_v63  ;;  %v1082_v1 = vpop.f32.mrb[26].mxu1 }
 0xe23   :  { %v1087_v11 = vmul.f32 0.5, %v1085_v61  ;;  %v1083_v16 = vpop.f32.mrb[27].mxu1 }
 0xe24   :  { %v1088_v7 = vmul.f32 %v1086_v10, %v1944_v51  ;;  %v1667_v51 = vld [vmem:[%s2353_s4 + $0x10] sm:$0xff]  }
 0xe25   :  { %1711 = vtanh.f32 %v1087_v11  ;;  %1631 = vmatprep.subr.bf16.mxu0 %v1667_v51 }
 0xe26   :  { %1713 = vtanh.f32 %v1088_v7  ;;  %1632 = vmatpush3.bf16.msra.mxu0 %v1667_v51 }
 0xe27   :  { %1633 = vmatprep.subr.bf16.mxu0 %v1668_v8 }
 0xe2a   :  { %1634 = vmatpush3.bf16.msra.mxu0 %v1668_v8 }
 0xe2f   :  { %v1712_v20 = vpop.eup %1711 }
 0xe30   :  { %v1714_v24 = vpop.eup %1713  ;;  %v1091_v62 = vmul.f32 0.5, %v1712_v20 }
 0xe31   :  { %v1092_v60 = vmul.f32 0.5, %v1714_v24 }
 0xe32   :  { %v1093_v63 = vadd.f32 0.5, %v1091_v62 }
 0xe33   :  { %v1094_v33 = vadd.f32 0.5, %v1092_v60 }
 0xe34   :  { %v1097_v35 = vmul.f32 %v1093_v63, %v1025_v44 }
 0xe35   :  { %v1096_v21 = vsel %vm440_vm1, %v1714_v24, %v1094_v33 }
 0xe36   :  { %v1098_v22 = vmul.f32 %v1096_v21, %v1093_v63 }
 0xe38   :  { %1100 = vrot.lane.b32.xlu0 %v1098_v22, %s1785_s3 }
 0xe3c   :  { %639 = vrot.lane.b32.xlu0 %v2087_v34, %s1785_s3 }
 0xe40   :  { %795 = vrot.lane.b32.xlu0 %v2137_v4, %s1785_s3 }
 0xe44   :  { %951 = vrot.lane.b32.xlu0 %v2185_v26, %s1785_s3  ;;  %v1114_v26 = vld [vmem:[#allocation3 + $0x10] sm:$0xff] }
 0xeaa   :  { %v1101_v14 = vpop.permute.xlu0 %1100 }
 0xeab   :  { %v1103_v15 = vadd.f32 %v1101_v14, %v1097_v35 }
 0xead   :  { %1715 = vtanh.f32 %v1103_v15 }
 0xeae   :  { %v640_v45 = vpop.permute.xlu0 %639 }
 0xeaf   :  { %643 = vst.msk [vmem:[#allocation3 + $0x8] sm:$0xff] %vm495_vm2, %v640_v45 }
 0xeb2   :  { %v796_v49 = vpop.permute.xlu0 %795 }
 0xeb3   :  { %799 = vst.msk [vmem:[#allocation3 + $0x18] sm:$0xff] %vm495_vm2, %v796_v49 }
 0xeb6   :  { %v952_v37 = vpop.permute.xlu0 %951  ;;  %v1113_v34 = vld [vmem:[#allocation3 + $0x8] sm:$0xff] }
 0xeb7   :  { %v1716_v52 = vpop.eup %1715  ;;  %955 = vst.msk [vmem:[#allocation3 + $0x28] sm:$0xff] %vm495_vm2, %v952_v37  ;;  %v1120_v4 = vpack.c.bf16 %v1113_v34, %v1112_v42 }
 0xeb8   :  { %v1105_v56 = vmul.f32 %v1716_v52, %v1096_v21 }
 0xeb9   :  { %1635 = vmatprep.mubr.msk.bf16.mxu0 %vm495_vm2, %v1120_v4 }
 0xeba   :  { %1107 = vrot.lane.b32.xlu0 %v1105_v56, %s1785_s3  ;;  %v1115_v31 = vld [vmem:[#allocation3 + $0x18] sm:$0xff] }
 0xebb   :  { %v1121_v18 = vpack.c.bf16 %v1115_v31, %v1114_v26 }
 0xebd   :  { %1636 = vmatmul.mubr.msk.bf16.vlgmr.msra.gmra.mrb[20].mxu0 %vm495_vm2, %v1121_v18 }
 0xebe   :  { %v1117_v36 = vld [vmem:[#allocation3 + $0x28] sm:$0xff] }
 0xebf   :  { %v1122_v23 = vpack.c.bf16 %v1117_v36, %v1116_v28 }
 0xec1   :  { %1639 = vmatprep.mubr.msk.bf16.mxu0 %vm495_vm2, %v1122_v23 }
 0xf2c   :  { %v1108_v59 = vpop.permute.xlu0 %1107 }
 0xf2d   :  { %1111 = vst.msk [vmem:[#allocation3 + $0x38] sm:$0xff] %vm495_vm2, %v1108_v59 }
 0xf34   :  { %v1119_v32 = vld [vmem:[#allocation3 + $0x38] sm:$0xff] }
 0xf35   :  { %v1123_v5 = vpack.c.bf16 %v1119_v32, %v1118_v30 }
 0xf37   :  { %1640 = vmatmul.mubr.msk.bf16.gmra.mrb[24].mxu0 %vm495_vm2, %v1123_v5 }
 0xf90   :  { %v1637_v13 = vpop.f32.mrb[20].mxu0 }
 0xf91   :  { %v1218_v29 = vadd.f32 %v1637_v13, %v2254_v6  ;;  %v1209_v19 = vpop.f32.mrb[21].mxu0 }
 0xf92   :  { %v1210_v39 = vadd.f32 %v2254_v6, %v1209_v19  ;;  %v1638_v41 = vpop.f32.mrb[22].mxu0 }
 0xf93   :  { %v1252_v38 = vrot.slane %v1218_v29, 4  ;;  %v1221_v58 = vadd.f32 %v1638_v41, %v2254_v6  ;;  %v1212_v43 = vpop.f32.mrb[23].mxu0  ;;  %v1613_v8 = vmul.f32 -1.442695, %v1218_v29 }
 0xf94   :  { %v1240_v57 = vrot.slane %v1210_v39, 4  ;;  %v1213_v27 = vadd.f32 %v2254_v6, %v1212_v43  ;;  %v1611_v15 = vmul.f32 -1.442695, %v1210_v39 }
 0xf95   :  { %v1253_v44 = vmax.f32 %v1218_v29, %v1252_v38  ;;  %v1258_v55 = vrot.slane %v1221_v58, 4  ;;  %v1614_v45 = vmul.f32 -1.442695, %v1221_v58 }
 0xf96   :  { %v1241_v48 = vmax.f32 %v1210_v39, %v1240_v57  ;;  %v1246_v50 = vrot.slane %v1213_v27, 4  ;;  %v1612_v49 = vmul.f32 -1.442695, %v1213_v27 }
 0xf97   :  { %v1254_v54 = vrot.slane %v1253_v44, 2  ;;  %v1259_v9 = vmax.f32 %v1221_v58, %v1258_v55 }
 0xf98   :  { %v1242_v0 = vrot.slane %v1241_v48, 2  ;;  %v1247_v2 = vmax.f32 %v1213_v27, %v1246_v50 }
 0xf99   :  { %v1255_v40 = vmax.f32 %v1253_v44, %v1254_v54  ;;  %v1260_v12 = vrot.slane %v1259_v9, 2 }
 0xf9a   :  { %v1243_v61 = vmax.f32 %v1241_v48, %v1242_v0  ;;  %v1248_v3 = vrot.slane %v1247_v2, 2 }
 0xf9b   :  { %v1256_v10 = vrot.slane %v1255_v40, 1  ;;  %v1261_v1 = vmax.f32 %v1259_v9, %v1260_v12 }
 0xf9c   :  { %v1244_v11 = vrot.slane %v1243_v61, 1  ;;  %v1249_v16 = vmax.f32 %v1247_v2, %v1248_v3 }
 0xf9d   :  { %v1257_v7 = vmax.f32 %v1255_v40, %v1256_v10  ;;  %v1262_v17 = vrot.slane %v1261_v1, 1 }
 0xf9e   :  { %v1245_v20 = vmax.f32 %v1243_v61, %v1244_v11  ;;  %v1250_v53 = vrot.slane %v1249_v16, 1 }
 0xf9f   :  { %v1290_v24 = vsub.f32 %v1218_v29, %v1257_v7  ;;  %v1263_v62 = vmax.f32 %v1261_v1, %v1262_v17 }
 0xfa0   :  { %v1288_v60 = vsub.f32 %v1210_v39, %v1245_v20  ;;  %v1251_v33 = vmax.f32 %v1249_v16, %v1250_v53 }
 0xfa1   :  { %v1300_v51 = vmul.f32 1.442695, %v1290_v24  ;;  %v1291_v63 = vsub.f32 %v1221_v58, %v1263_v62 }
 0xfa2   :  { %v1296_v21 = vmul.f32 1.442695, %v1288_v60  ;;  %v1289_v22 = vsub.f32 %v1213_v27, %v1251_v33 }
 0xfa3   :  { %1717 = vpow2.f32 %v1300_v51  ;;  %v1302_v35 = vmul.f32 1.442695, %v1291_v63 }
 0xfa4   :  { %1719 = vpow2.f32 %v1296_v21  ;;  %v1298_v14 = vmul.f32 1.442695, %v1289_v22 }
 0xfa5   :  { %1721 = vpow2.f32 %v1302_v35 }
 0xfa6   :  { %1723 = vpow2.f32 %v1613_v8 }
 0xfa7   :  { %1725 = vpow2.f32 %v1298_v14 }
 0xfa8   :  { %1727 = vpow2.f32 %v1611_v15 }
 0xfa9   :  { %1729 = vpow2.f32 %v1614_v45 }
 0xfaa   :  { %1731 = vpow2.f32 %v1612_v49 }
 0xfad   :  { %v1718_v37 = vpop.eup %1717 }
 0xfae   :  { %v1720_v42 = vpop.eup %1719  ;;  %v1324_v34 = vrot.slane %v1718_v37, 4 }
 0xfaf   :  { %v1312_v52 = vrot.slane %v1720_v42, 4  ;;  %v1722_v4 = vpop.eup %1721 }
 0xfb0   :  { %v1325_v56 = vadd.f32 %v1718_v37, %v1324_v34  ;;  %v1724_v26 = vpop.eup %1723  ;;  %v1330_v18 = vrot.slane %v1722_v4, 4 }
 0xfb1   :  { %v1313_v31 = vadd.f32 %v1720_v42, %v1312_v52  ;;  %v1726_v28 = vpop.eup %1725  ;;  %v1402_v13 = vadd.f32 1.0, %v1724_v26 }
 0xfb2   :  { %v1326_v36 = vrot.slane %v1325_v56, 2  ;;  %v1331_v59 = vadd.f32 %v1722_v4, %v1330_v18  ;;  %v1318_v30 = vrot.slane %v1726_v28, 4  ;;  %v1728_v5 = vpop.eup %1727 }
 0xfb3   :  { %v1314_v23 = vrot.slane %v1313_v31, 2  ;;  %v1730_v38 = vpop.eup %1729  ;;  %v1400_v44 = vadd.f32 1.0, %v1728_v5  ;;  %1733 = vrcp.f32 %v1402_v13 }
 0xfb4   :  { %v1327_v32 = vadd.f32 %v1326_v36, %v1325_v56  ;;  %v1332_v19 = vrot.slane %v1331_v59, 2  ;;  %v1319_v39 = vadd.f32 %v1726_v28, %v1318_v30  ;;  %v1732_v54 = vpop.eup %1731  ;;  %v1403_v9 = vadd.f32 1.0, %v1730_v38 }
 0xfb5   :  { %v1315_v29 = vadd.f32 %v1314_v23, %v1313_v31  ;;  %v1401_v12 = vadd.f32 1.0, %v1732_v54 }
 0xfb6   :  { %v1328_v41 = vrot.slane %v1327_v32, 1  ;;  %v1333_v43 = vadd.f32 %v1332_v19, %v1331_v59  ;;  %v1320_v57 = vrot.slane %v1319_v39, 2 }
 0xfb7   :  { %v1316_v58 = vrot.slane %v1315_v29, 1 }
 0xfb8   :  { %v1329_v27 = vadd.f32 %v1328_v41, %v1327_v32  ;;  %v1334_v48 = vrot.slane %v1333_v43, 1  ;;  %v1321_v50 = vadd.f32 %v1320_v57, %v1319_v39 }
 0xfb9   :  { %v1317_v55 = vadd.f32 %v1316_v58, %v1315_v29 }
 0xfba   :  { %1735 = vrcp.f32 %v1329_v27  ;;  %v1335_v0 = vadd.f32 %v1334_v48, %v1333_v43  ;;  %v1322_v2 = vrot.slane %v1321_v50, 1 }
 0xfbb   :  { %1737 = vrcp.f32 %v1317_v55 }
 0xfbc   :  { %1739 = vrcp.f32 %v1400_v44  ;;  %v1323_v40 = vadd.f32 %v1322_v2, %v1321_v50 }
 0xfbd   :  { %1741 = vrcp.f32 %v1335_v0  ;;  %v1734_v61 = vpop.eup %1733 }
 0xfbe   :  { %1743 = vrcp.f32 %v1403_v9 }
 0xfbf   :  { %1745 = vrcp.f32 %v1323_v40 }
 0xfc0   :  { %1747 = vrcp.f32 %v1401_v12 }
 0xfc4   :  { %v1736_v3 = vpop.eup %1735 }
 0xfc5   :  { %v1738_v10 = vpop.eup %1737  ;;  %v1365_v1 = vmul.f32 %v1736_v3, %v1718_v37 }
 0xfc6   :  { %v1740_v11 = vpop.eup %1739  ;;  %v1361_v16 = vmul.f32 %v1738_v10, %v1720_v42 }
 0xfc7   :  { %v1742_v7 = vpop.eup %1741  ;;  %v1427_v17 = vsel %vm1424_vm3, %v1365_v1, %v1734_v61 }
 0xfc8   :  { %v1744_v20 = vpop.eup %1743  ;;  %v1425_v53 = vsel %vm1424_vm3, %v1361_v16, %v1740_v11  ;;  %v1367_v24 = vmul.f32 %v1742_v7, %v1722_v4 }
 0xfc9   :  { %v1746_v62 = vpop.eup %1745  ;;  %v1433_v60 = vcombine.low %v1425_v53, %v1427_v17  ;;  %v1434_v33 = vcombine.high %v1425_v53, %v1427_v17 }
 0xfca   :  { %v1428_v51 = vsel %vm1424_vm3, %v1367_v24, %v1744_v20  ;;  %v1363_v63 = vmul.f32 %v1746_v62, %v1726_v28  ;;  %v1748_v21 = vpop.eup %1747 }
 0xfcb   :  { %v2270_v14 = vrot.slane %v1433_v60, %v1938_v46  ;;  %v2273_v15 = vrot.slane %v1434_v33, %v1938_v46 }
 0xfcc   :  { %v1426_v22 = vsel %vm1424_vm3, %v1363_v63, %v1748_v21 }
 0xfcd   :  { %v1449_v8 = vcombine.low %v1426_v22, %v1428_v51  ;;  %v1450_v35 = vcombine.high %v1426_v22, %v1428_v51 }
 0xfcf   :  { %v2276_v45 = vrot.slane %v1449_v8, %v1938_v46  ;;  %v2279_v49 = vrot.slane %v1450_v35, %v1938_v46 }
 0xfd1   :  { %v1497_v37 = vcombine.low %v2270_v14, %v2276_v45  ;;  %v1498_v42 = vcombine.high %v2270_v14, %v2276_v45  ;;  %v1513_v34 = vcombine.low %v2273_v15, %v2279_v49  ;;  %v1514_v52 = vcombine.high %v2273_v15, %v2279_v49 }
 0xfd3   :  { %v1505_v25 = vrot.slane %v1497_v37, %v1940_v47  ;;  %v1528_v37 = vrot.slane %v1514_v52, %v1940_v47 }
0x100a   :  { %v1641_v4 = vpop.f32.mrb[24].mxu0 }
0x100b   :  { %v1234_v56 = vadd.f32 %v1641_v4, %v2254_v6  ;;  %v1225_v26 = vpop.f32.mrb[25].mxu0 }
0x100c   :  { %v1226_v31 = vadd.f32 %v2254_v6, %v1225_v26  ;;  %v1642_v18 = vpop.f32.mrb[26].mxu0 }
0x100d   :  { %v1276_v28 = vrot.slane %v1234_v56, 4  ;;  %v1237_v36 = vadd.f32 %v1642_v18, %v2254_v6  ;;  %v1228_v23 = vpop.f32.mrb[27].mxu0  ;;  %v1617_v16 = vmul.f32 -1.442695, %v1234_v56 }
0x100e   :  { %v1264_v59 = vrot.slane %v1226_v31, 4  ;;  %v1229_v30 = vadd.f32 %v2254_v6, %v1228_v23  ;;  %v1615_v20 = vmul.f32 -1.442695, %v1226_v31 }
0x100f   :  { %v1277_v32 = vmax.f32 %v1234_v56, %v1276_v28  ;;  %v1282_v5 = vrot.slane %v1237_v36, 4  ;;  %v1618_v53 = vmul.f32 -1.442695, %v1237_v36 }
0x1010   :  { %v1265_v13 = vmax.f32 %v1226_v31, %v1264_v59  ;;  %v1270_v29 = vrot.slane %v1229_v30, 4  ;;  %v1616_v24 = vmul.f32 -1.442695, %v1229_v30 }
0x1011   :  { %v1278_v19 = vrot.slane %v1277_v32, 2  ;;  %v1283_v39 = vmax.f32 %v1237_v36, %v1282_v5 }
0x1012   :  { %v1266_v41 = vrot.slane %v1265_v13, 2  ;;  %v1271_v38 = vmax.f32 %v1229_v30, %v1270_v29 }
0x1013   :  { %v1279_v58 = vmax.f32 %v1277_v32, %v1278_v19  ;;  %v1284_v43 = vrot.slane %v1283_v39, 2 }
0x1014   :  { %v1267_v57 = vmax.f32 %v1265_v13, %v1266_v41  ;;  %v1272_v27 = vrot.slane %v1271_v38, 2 }
0x1015   :  { %v1280_v44 = vrot.slane %v1279_v58, 1  ;;  %v1285_v55 = vmax.f32 %v1283_v39, %v1284_v43 }
0x1016   :  { %v1268_v48 = vrot.slane %v1267_v57, 1  ;;  %v1273_v50 = vmax.f32 %v1271_v38, %v1272_v27 }
0x1017   :  { %v1281_v54 = vmax.f32 %v1279_v58, %v1280_v44  ;;  %v1286_v9 = vrot.slane %v1285_v55, 1 }
0x1018   :  { %v1269_v0 = vmax.f32 %v1267_v57, %v1268_v48  ;;  %v1274_v6 = vrot.slane %v1273_v50, 1 }
0x1019   :  { %v1294_v2 = vsub.f32 %v1234_v56, %v1281_v54  ;;  %v1287_v40 = vmax.f32 %v1285_v55, %v1286_v9 }
0x101a   :  { %v1292_v12 = vsub.f32 %v1226_v31, %v1269_v0  ;;  %v1275_v61 = vmax.f32 %v1273_v50, %v1274_v6 }
0x101b   :  { %v1308_v3 = vmul.f32 1.442695, %v1294_v2  ;;  %v1295_v10 = vsub.f32 %v1237_v36, %v1287_v40 }
0x101c   :  { %v1304_v1 = vmul.f32 1.442695, %v1292_v12  ;;  %v1293_v11 = vsub.f32 %v1229_v30, %v1275_v61 }
0x101d   :  { %1749 = vpow2.f32 %v1308_v3  ;;  %v1310_v7 = vmul.f32 1.442695, %v1295_v10 }
0x101e   :  { %1751 = vpow2.f32 %v1304_v1  ;;  %v1306_v17 = vmul.f32 1.442695, %v1293_v11 }
0x101f   :  { %1753 = vpow2.f32 %v1310_v7 }
0x1020   :  { %1755 = vpow2.f32 %v1617_v16 }
0x1021   :  { %1757 = vpow2.f32 %v1306_v17 }
0x1022   :  { %1759 = vpow2.f32 %v1615_v20 }
0x1023   :  { %1761 = vpow2.f32 %v1618_v53 }
0x1024   :  { %1763 = vpow2.f32 %v1616_v24 }
0x1027   :  { %v1750_v62 = vpop.eup %1749 }
0x1028   :  { %v1752_v60 = vpop.eup %1751  ;;  %v1348_v33 = vrot.slane %v1750_v62, 4 }
0x1029   :  { %v1336_v51 = vrot.slane %v1752_v60, 4  ;;  %v1754_v63 = vpop.eup %1753 }
0x102a   :  { %v1349_v21 = vadd.f32 %v1750_v62, %v1348_v33  ;;  %v1756_v22 = vpop.eup %1755  ;;  %v1354_v35 = vrot.slane %v1754_v63, 4 }
0x102b   :  { %v1337_v8 = vadd.f32 %v1752_v60, %v1336_v51  ;;  %v1758_v4 = vpop.eup %1757  ;;  %v1406_v23 = vadd.f32 1.0, %v1756_v22 }
0x102c   :  { %v1350_v56 = vrot.slane %v1349_v21, 2  ;;  %v1355_v18 = vadd.f32 %v1754_v63, %v1354_v35  ;;  %v1342_v31 = vrot.slane %v1758_v4, 4  ;;  %v1760_v36 = vpop.eup %1759 }
0x102d   :  { %v1338_v26 = vrot.slane %v1337_v8, 2  ;;  %v1762_v13 = vpop.eup %1761  ;;  %v1404_v38 = vadd.f32 1.0, %v1760_v36  ;;  %1765 = vrcp.f32 %v1406_v23  ;;  %v1521_v36 = vrot.slane %v1513_v34, %v1940_v47 }
0x102e   :  { %v1351_v28 = vadd.f32 %v1350_v56, %v1349_v21  ;;  %v1356_v30 = vrot.slane %v1355_v18, 2  ;;  %v1343_v32 = vadd.f32 %v1758_v4, %v1342_v31  ;;  %v1764_v27 = vpop.eup %1763  ;;  %v1407_v44 = vadd.f32 1.0, %v1762_v13 }
0x102f   :  { %v1339_v59 = vadd.f32 %v1338_v26, %v1337_v8  ;;  %v1405_v54 = vadd.f32 1.0, %v1764_v27 }
0x1030   :  { %v1352_v5 = vrot.slane %v1351_v28, 1  ;;  %v1357_v19 = vadd.f32 %v1356_v30, %v1355_v18  ;;  %v1344_v39 = vrot.slane %v1343_v32, 2 }
0x1031   :  { %v1340_v29 = vrot.slane %v1339_v59, 1 }
0x1032   :  { %v1353_v41 = vadd.f32 %v1352_v5, %v1351_v28  ;;  %v1358_v43 = vrot.slane %v1357_v19, 1  ;;  %v1345_v57 = vadd.f32 %v1344_v39, %v1343_v32 }
0x1033   :  { %v1341_v58 = vadd.f32 %v1340_v29, %v1339_v59 }
0x1034   :  { %1767 = vrcp.f32 %v1353_v41  ;;  %v1359_v55 = vadd.f32 %v1358_v43, %v1357_v19  ;;  %v1346_v48 = vrot.slane %v1345_v57, 1 }
0x1035   :  { %1769 = vrcp.f32 %v1341_v58 }
0x1036   :  { %1771 = vrcp.f32 %v1404_v38  ;;  %v1347_v50 = vadd.f32 %v1346_v48, %v1345_v57 }
0x1037   :  { %1773 = vrcp.f32 %v1359_v55  ;;  %v1766_v9 = vpop.eup %1765 }
0x1038   :  { %1775 = vrcp.f32 %v1407_v44 }
0x1039   :  { %1777 = vrcp.f32 %v1347_v50 }
0x103a   :  { %1779 = vrcp.f32 %v1405_v54 }
0x103e   :  { %v1768_v0 = vpop.eup %1767 }
0x103f   :  { %v1770_v6 = vpop.eup %1769  ;;  %v1373_v2 = vmul.f32 %v1768_v0, %v1750_v62 }
0x1040   :  { %v1772_v40 = vpop.eup %1771  ;;  %v1369_v12 = vmul.f32 %v1770_v6, %v1752_v60 }
0x1041   :  { %v1774_v61 = vpop.eup %1773  ;;  %v1431_v3 = vsel %vm1424_vm3, %v1373_v2, %v1766_v9 }
0x1042   :  { %v1776_v10 = vpop.eup %1775  ;;  %v1429_v1 = vsel %vm1424_vm3, %v1369_v12, %v1772_v40  ;;  %v1375_v11 = vmul.f32 %v1774_v61, %v1754_v63 }
0x1043   :  { %v1778_v16 = vpop.eup %1777  ;;  %v1465_v7 = vcombine.low %v1429_v1, %v1431_v3  ;;  %v1466_v17 = vcombine.high %v1429_v1, %v1431_v3 }
0x1044   :  { %v1432_v20 = vsel %vm1424_vm3, %v1375_v11, %v1776_v10  ;;  %v1371_v53 = vmul.f32 %v1778_v16, %v1758_v4  ;;  %v1780_v24 = vpop.eup %1779  ;;  %v1512_v4 = vrot.slane %v1498_v42, %v1940_v47 }
0x1045   :  { %v1473_v51 = vrot.slane %v1465_v7, %v1938_v46  ;;  %v1480_v21 = vrot.slane %v1466_v17, %v1938_v46 }
0x1046   :  { %v1430_v62 = vsel %vm1424_vm3, %v1371_v53, %v1780_v24 }
0x1047   :  { %v1481_v60 = vcombine.low %v1430_v62, %v1432_v20  ;;  %v1482_v33 = vcombine.high %v1430_v62, %v1432_v20 }
0x1049   :  { %v1489_v22 = vrot.slane %v1481_v60, %v1938_v46  ;;  %v1496_v63 = vrot.slane %v1482_v33, %v1938_v46 }
0x104b   :  { %v1529_v8 = vcombine.low %v1473_v51, %v1489_v22  ;;  %v1530_v35 = vcombine.high %v1473_v51, %v1489_v22  ;;  %v1545_v56 = vcombine.low %v1480_v21, %v1496_v63  ;;  %v1546_v26 = vcombine.high %v1480_v21, %v1496_v63 }
0x104d   :  { %v1537_v18 = vrot.slane %v1529_v8, %v1940_v47  ;;  %v1544_v31 = vrot.slane %v1530_v35, %v1940_v47  ;;  %v1553_v46 = vrot.slane %v1545_v56, %v1940_v47  ;;  %v1560_v28 = vrot.slane %v1546_v26, %v1940_v47 }
0x104f   :  { %v1561_v14 = vcombine.low %v1505_v25, %v1537_v18  ;;  %v1562_v45 = vcombine.high %v1505_v25, %v1537_v18  ;;  %v1563_v42 = vcombine.low %v1512_v4, %v1544_v31  ;;  %v1564_v23 = vcombine.high %v1512_v4, %v1544_v31 }
0x1050   :  { %v1565_v59 = vcombine.low %v1521_v36, %v1553_v46  ;;  %v1566_v30 = vcombine.high %v1521_v36, %v1553_v46  ;;  %v1567_v32 = vcombine.low %v1528_v37, %v1560_v28  ;;  %v1568_v5 = vcombine.high %v1528_v37, %v1560_v28 }
0x1051   :  { %1569 = vst [vmem:[%s2355_s6] sm:$0xff] %v1561_v14  ;;  %1570 = vst [vmem:[%s2355_s6 + $0x8] sm:$0xff] %v1562_v45 }
0x1052   :  { %1571 = vst [vmem:[%s2355_s6 + $0x10] sm:$0xff] %v1563_v42  ;;  %1572 = vst [vmem:[%s2355_s6 + $0x18] sm:$0xff] %v1564_v23 }
0x1053   :  { %1573 = vst [vmem:[%s2355_s6 + $0x20] sm:$0xff] %v1565_v59  ;;  %1574 = vst [vmem:[%s2355_s6 + $0x28] sm:$0xff] %v1566_v30 }
0x1054   :  { %1575 = vst [vmem:[%s2355_s6 + $0x30] sm:$0xff] %v1567_v32  ;;  %1576 = vst [vmem:[%s2355_s6 + $0x38] sm:$0xff] %v1568_v5 }

</bundles_post_ra>
